<compile_context>
chip_gen: v5e
topology: v5e:2x2
jax: 0.10.0
libtpu: 0.0.40
codegen_flags: <defaults>
</compile_context>

<pallas_src>
import functools

import jax
import jax.numpy as jnp
from jax.experimental import pallas as pl
from jax.experimental.pallas import tpu as pltpu


def _sigmoid(x):
    return 1.0 / (1.0 + jnp.exp(-x))


def cbam_kernel(x_ref, w1_ref, b1_ref, w2_ref, b2_ref, cmean_ref,
                rowm_ref, colm_ref, wtab_ref, bconv_ref,
                o_ref, smap_ref, *, W, HW, HWp, Bt):
    """Processes Bt batch elements; x_ref is (Bt, C, HWp) with HWp % 128 == 0."""
    inv_hw = jnp.float32(1.0 / HW)

    # ---- Loop-invariant reads / broadcasts hoisted out of the batch loop ----
    w1t = w1_ref[...]                                       # (C, hidden)
    b1 = b1_ref[...]                                        # (1, hidden)
    w2 = w2_ref[...]                                        # (C, hidden)
    b2 = b2_ref[...]                                        # (C, 1)
    cmean = cmean_ref[...]                                  # (8, C); row 0 = 1/C
    wtab = wtab_ref[...]                                    # (16, 8)
    wcols = [wtab[0:14, j:j + 1] for j in range(7)]         # 7 x (14, 1)
    rowm_rows = [rowm_ref[k:k + 1, :] for k in range(7)]    # 7 x (1, HWp)
    colm_rows = [colm_ref[j:j + 1, :] for j in range(7)]    # 7 x (1, HWp)
    bias = bconv_ref[0]

    if HWp > HW:
        # Additive mask so zero-padded spatial columns never win the channel max.
        lane = jax.lax.broadcasted_iota(jnp.int32, (1, HWp), 1)
        pad_neg = jnp.where(lane < HW, 0.0, -1e30).astype(jnp.float32)

    def shared_mlp(p):                                      # (C, 1) -> (C, 1)
        # Exact-f32 VPU/XLU path; at N=1 an MXU matmul would be <1% utilized.
        h = jnp.sum(w1t * p, axis=0, keepdims=True) + b1
        h = jnp.maximum(h, 0.0)
        return jnp.sum(w2 * h, axis=1, keepdims=True) + b2

    def body(bi, carry):
        x = x_ref[bi].astype(jnp.float32)                   # (C, HWp)

        # ---------------- Channel attention ----------------
        # Spatial pads are zero, so the sum over HWp equals the sum over HW.
        avg_p = jnp.sum(x, axis=1, keepdims=True) * inv_hw  # (C, 1)
        if HWp > HW:
            max_p = jnp.max(x + pad_neg, axis=1, keepdims=True)
        else:
            max_p = jnp.max(x, axis=1, keepdims=True)       # (C, 1)
        # TODO(synk): for very large C, batch both pools (and all Bt elements)
        # into a single (hidden, C) x (C, 2*Bt) MXU matmul instead of 2 calls.
        ca = _sigmoid(shared_mlp(avg_p) + shared_mlp(max_p))  # (C, 1)
        xc = x * ca                                           # (C, HWp)

        # ---------------- Spatial attention ----------------
        # Channel mean on the (otherwise idle) MXU frees the XLU, the
        # saturating unit in the conv phase below.  cmean row 0 holds 1/C.
        avg_s = jnp.dot(cmean, xc,
                        preferred_element_type=jnp.float32)[0:1, :]  # (1, HWp)
        max_s = jnp.max(xc, axis=0, keepdims=True)                   # (1, HWp)

        # Stage the pooled pair in scratch rows 14:16 so each dy shift moves
        # both channels with a single pltpu.roll.
        smap_ref[14:15, :] = avg_s
        smap_ref[15:16, :] = max_s
        pair = smap_ref[14:16, :]                                    # (2, HWp)

        # Phase B: 7 dy-shifts of the packed pair, pre-masked by the row mask,
        # packed into a (14, HWp) buffer (rows 2k = avg, 2k+1 = max).
        for k in range(7):                                           # dy = k - 3
            dy = k - 3
            sh = (-dy * W) % HWp
            rolled = pltpu.roll(pair, sh, axis=1) if sh else pair
            smap_ref[2 * k:2 * k + 2, :] = rolled * rowm_rows[k]
        stacked = smap_ref[0:14, :]                                  # (14, HWp)

        # Phase C (reordered per review): per-dx weighted sublane reduction
        # FIRST, then roll the reduced (1, HWp) row by dx.  The roll commutes
        # with the per-sublane scalar multiply + sum, so results are identical
        # while the XLU moves 1 row instead of 14.
        acc = jnp.zeros((1, HWp), jnp.float32)
        for j in range(7):                                           # dx = j - 3
            dx = j - 3
            s_j = jnp.sum(stacked * wcols[j], axis=0, keepdims=True)  # (1, HWp)
            sh = (-dx) % HWp
            r = pltpu.roll(s_j, sh, axis=1) if sh else s_j
            acc = acc + colm_rows[j] * r

        sa = _sigmoid(acc + bias)                                    # (1, HWp)
        o_ref[bi] = (xc * sa).astype(o_ref.dtype)
        return carry

    jax.lax.fori_loop(0, Bt, body, 0)


def _tpu_info():
    """(multi_tensorcore, physical_vmem_bytes) with conservative fallbacks."""
    kind = ""
    try:
        kind = jax.devices()[0].device_kind.lower()
    except Exception:
        pass
    # v7x has 2 TensorCores per chip; v4/v5p megacore also profits from a
    # parallel grid split.  v5e/v6e are single-TC.
    multi_tc = ("7" in kind) or ("v4" in kind) or ("v5p" in kind)
    vmem_bytes = (64 << 20) if multi_tc else (128 << 20)
    try:
        vmem_bytes = int(pltpu.get_tpu_info().vmem_capacity_bytes)
    except Exception:
        pass
    return multi_tc, vmem_bytes


def _pick_block_batch(B, per_elem_bytes, *, target_bytes, cap_bytes,
                      require_two_steps, max_bt=16):
    """Fold several batch elements into one block to amortize the ~0.35us
    grid-step overhead.  On multi-TensorCore chips keep >= 2 grid steps so the
    parallel grid axis can be sharded across cores."""
    bt = 1
    for cand in range(1, B + 1):
        if cand > max_bt:
            break
        if B % cand:
            continue
        if cand * per_elem_bytes > cap_bytes:
            break
        if require_two_steps and B > 1 and B // cand < 2:
            break
        bt = cand
        if cand * per_elem_bytes >= target_bytes:
            break
    return bt


def cbam_forward(x, params):
    """x: (B, C, H, W) float32, NCHW (PyTorch convention)."""
    B, C, H, W = x.shape
    HW = H * W
    HWp = ((HW + 127) // 128) * 128        # lane-dense (multiple-of-128) spatial dim
    w1, b1, w2, b2, conv_w, conv_b = (params["w1"], params["b1"], params["w2"],
                                      params["b2"], params["conv_w"], params["conv_b"])
    hidden = w1.shape[0]

    # Channel-attention MLP weights (exact-f32 elementwise path layout).
    w1t = jnp.transpose(w1).astype(jnp.float32)            # (C, hidden)
    b1_arg = b1.reshape(1, hidden).astype(jnp.float32)
    w2_arg = w2.astype(jnp.float32)                        # (C, hidden)
    b2_arg = b2.reshape(C, 1).astype(jnp.float32)

    # Channel-mean operator for the MXU: row 0 = 1/C, rows 1..7 zero (M padded
    # to a full sublane tile so the matmul shape is MXU-friendly).
    cmean = jnp.zeros((8, C), jnp.float32).at[0, :].set(1.0 / C)

    # Fold the (1,2,7,7) conv weights into per-dx columns:
    #   wtab[2k,   j] = weight(avg-channel, dy=k-3, dx=j-3)
    #   wtab[2k+1, j] = weight(max-channel, dy=k-3, dx=j-3)
    wtab = jnp.zeros((16, 8), jnp.float32)
    wtab = wtab.at[0:14:2, 0:7].set(conv_w[0, 0].astype(jnp.float32))
    wtab = wtab.at[1:14:2, 0:7].set(conv_w[0, 1].astype(jnp.float32))
    bconv = conv_b.reshape(1).astype(jnp.float32)

    # Separable boundary masks for the 49 conv taps, hoisted out of the kernel.
    pos = jnp.arange(HW, dtype=jnp.int32)
    hh = pos // W
    ww = pos % W
    zero_row = jnp.zeros((HW,), jnp.bool_)
    rowm = jnp.stack([(hh + (k - 3) >= 0) & (hh + (k - 3) < H) for k in range(7)]
                     + [zero_row], axis=0).astype(jnp.float32)        # (8, HW)
    colm = jnp.stack([(ww + (j - 3) >= 0) & (ww + (j - 3) < W) for j in range(7)]
                     + [zero_row], axis=0).astype(jnp.float32)        # (8, HW)

    xf = x.reshape(B, C, HW)
    if HWp > HW:
        pad = HWp - HW
        xf = jnp.pad(xf, ((0, 0), (0, 0), (0, pad)))                  # zero pads
        rowm = jnp.pad(rowm, ((0, 0), (0, pad)))                      # pads masked off
        colm = jnp.pad(colm, ((0, 0), (0, pad)))

    multi_tc, phys_vmem = _tpu_info()
    per_elem_bytes = C * HWp * 4
    if multi_tc:
        # v7x: 64 MiB VMEM / 2 TCs -> smaller blocks, keep >= 2 grid steps.
        target_bytes, cap_bytes = 1 << 20, 4 << 20
    else:
        # Single-TC v5e/v6e: bigger blocks; one grid step for the whole batch is fine.
        target_bytes, cap_bytes = 3 << 20, 8 << 20
    Bt = _pick_block_batch(B, per_elem_bytes, target_bytes=target_bytes,
                           cap_bytes=cap_bytes, require_two_steps=multi_tc)
    grid = (B // Bt,)
    # TODO(synk): when B == 1 on v7x one TensorCore idles; a two-kernel split
    # (channel attention, then a spatially-tiled apply kernel) would fix it.

    # VMEM: double-buffered in/out blocks + per-iteration f32 temporaries +
    # mask/weight/scratch slabs.  Raise the scoped limit only when needed
    # (v5e default is 16 MiB) and never request more than 3/4 of physical VMEM.
    est = 4 * Bt * per_elem_bytes + 6 * C * HWp * 4 + 64 * HWp * 4 + (1 << 20)
    vmem_cap = (phys_vmem * 3) // 4
    compiler_kwargs = {}
    if est > (12 << 20):
        compiler_kwargs["vmem_limit_bytes"] = int(min(est + (8 << 20), vmem_cap))

    kernel = functools.partial(cbam_kernel, W=W, HW=HW, HWp=HWp, Bt=Bt)
    out = pl.pallas_call(
        kernel,
        out_shape=jax.ShapeDtypeStruct((B, C, HWp), x.dtype),
        grid=grid,
        in_specs=[
            pl.BlockSpec((Bt, C, HWp), lambda b: (b, 0, 0)),          # x block
            pl.BlockSpec((C, hidden), lambda b: (0, 0)),              # W1^T
            pl.BlockSpec((1, hidden), lambda b: (0, 0)),              # b1
            pl.BlockSpec((C, hidden), lambda b: (0, 0)),              # W2
            pl.BlockSpec((C, 1), lambda b: (0, 0)),                   # b2
            pl.BlockSpec((8, C), lambda b: (0, 0)),                   # channel-mean op
            pl.BlockSpec((8, HWp), lambda b: (0, 0)),                 # row masks
            pl.BlockSpec((8, HWp), lambda b: (0, 0)),                 # col masks
            pl.BlockSpec((16, 8), lambda b: (0, 0)),                  # folded conv weights
            pl.BlockSpec(memory_space=pltpu.MemorySpace.SMEM),        # conv bias (1,)
        ],
        out_specs=pl.BlockSpec((Bt, C, HWp), lambda b: (b, 0, 0)),
        scratch_shapes=[pltpu.VMEM((16, HWp), jnp.float32)],
        compiler_params=pltpu.CompilerParams(
            dimension_semantics=("parallel",), **compiler_kwargs),
    )(xf, w1t, b1_arg, w2_arg, b2_arg, cmean, rowm, colm, wtab, bconv)
    return out[:, :, :HW].reshape(B, C, H, W)


def cbam_reference(x, params):
    """Pure-JAX reference mirroring the PyTorch forward."""
    w1, b1, w2, b2, cw, cb = (params["w1"], params["b1"], params["w2"],
                              params["b2"], params["conv_w"], params["conv_b"])
    avg = x.mean(axis=(2, 3))
    mx = x.max(axis=(2, 3))

    def fc(v):
        return jnp.maximum(v @ w1.T + b1, 0.0) @ w2.T + b2

    ca = _sigmoid(fc(avg) + fc(mx))[:, :, None, None]
    xc = x * ca
    avg_s = xc.mean(axis=1, keepdims=True)
    max_s = xc.max(axis=1, keepdims=True)
    sm = jnp.concatenate([avg_s, max_s], axis=1)
    conv = jax.lax.conv_general_dilated(
        sm, cw, window_strides=(1, 1), padding=((3, 3), (3, 3)),
        dimension_numbers=("NCHW", "OIHW", "NCHW")) + cb.reshape(1, 1, 1, 1)
    return _sigmoid(conv) * xc


def init_params(key, channels, reduction=16):
    hidden = channels // reduction
    k1, k2, k3, k4, k5, k6 = jax.random.split(key, 6)
    return {
        "w1": jax.random.normal(k1, (hidden, channels), jnp.float32) * 0.2,
        "b1": jax.random.normal(k2, (hidden,), jnp.float32) * 0.1,
        "w2": jax.random.normal(k3, (channels, hidden), jnp.float32) * 0.2,
        "b2": jax.random.normal(k4, (channels,), jnp.float32) * 0.1,
        "conv_w": jax.random.normal(k5, (1, 2, 7, 7), jnp.float32) * 0.1,
        "conv_b": jax.random.normal(k6, (1,), jnp.float32) * 0.1,
    }


if __name__ == "__main__":
    B, C, H, W = 2, 32, 16, 16          # reduction=16 -> hidden=2
    key = jax.random.PRNGKey(0)
    k_x, k_p = jax.random.split(key)
    x = jax.random.normal(k_x, (B, C, H, W), jnp.float32)
    params = init_params(k_p, C, reduction=16)

    out = cbam_forward(x, params)
    out = jax.block_until_ready(out)

    ref = cbam_reference(x, params)
    # Tolerance allows for MXU matmul precision on the channel-mean dot vs. the
    # XLA reference; structural/mask errors would show up as O(0.1) deviations.
    if not jnp.allclose(out, ref, atol=1e-3, rtol=1e-3):
        raise AssertionError("Pallas CBAM output does not match reference")

    print("KERNEL_OK")
</pallas_src>

<mosaic_0001>
module attributes {stable_mosaic.version = 11 : i64} {
  func.func @cbam_kernel(%arg0: i32, %arg1: memref<2x32x256xf32, #tpu.memory_space<vmem>>, %arg2: memref<32x2xf32, #tpu.memory_space<vmem>>, %arg3: memref<1x2xf32, #tpu.memory_space<vmem>>, %arg4: memref<32x2xf32, #tpu.memory_space<vmem>>, %arg5: memref<32x1xf32, #tpu.memory_space<vmem>>, %arg6: memref<8x32xf32, #tpu.memory_space<vmem>>, %arg7: memref<8x256xf32, #tpu.memory_space<vmem>>, %arg8: memref<8x256xf32, #tpu.memory_space<vmem>>, %arg9: memref<16x8xf32, #tpu.memory_space<vmem>>, %arg10: memref<1xf32, #tpu.memory_space<smem>>, %arg11: memref<2x32x256xf32, #tpu.memory_space<vmem>>, %arg12: memref<16x256xf32, #tpu.memory_space<vmem>>) attributes {dimension_semantics = [#tpu.dimension_semantics<parallel>], iteration_bounds = array<i64: 1>, scalar_prefetch = 0 : i64, scratch_operands = 1 : i64, tpu.core_type = #tpu.core_type<tc>, window_params = [{transform_indices = @transform_0, window_bounds = array<i64: 2, 32, 256>}, {pipeline_mode = #tpu.pipeline_mode<synchronous>, transform_indices = @transform_1, window_bounds = array<i64: 32, 2>}, {pipeline_mode = #tpu.pipeline_mode<synchronous>, transform_indices = @transform_2, window_bounds = array<i64: 1, 2>}, {pipeline_mode = #tpu.pipeline_mode<synchronous>, transform_indices = @transform_3, window_bounds = array<i64: 32, 2>}, {pipeline_mode = #tpu.pipeline_mode<synchronous>, transform_indices = @transform_4, window_bounds = array<i64: 32, 1>}, {pipeline_mode = #tpu.pipeline_mode<synchronous>, transform_indices = @transform_5, window_bounds = array<i64: 8, 32>}, {pipeline_mode = #tpu.pipeline_mode<synchronous>, transform_indices = @transform_6, window_bounds = array<i64: 8, 256>}, {pipeline_mode = #tpu.pipeline_mode<synchronous>, transform_indices = @transform_7, window_bounds = array<i64: 8, 256>}, {pipeline_mode = #tpu.pipeline_mode<synchronous>, transform_indices = @transform_8, window_bounds = array<i64: 16, 8>}, {transform_indices = @transform_9, window_bounds = array<i64: 1>}, {transform_indices = @transform_10, window_bounds = array<i64: 2, 32, 256>}]} {
    %c0 = arith.constant 0 : index
    %c0_0 = arith.constant 0 : index
    %0 = vector.load %arg2[%c0, %c0_0] : memref<32x2xf32, #tpu.memory_space<vmem>>, vector<32x2xf32>
    %c0_1 = arith.constant 0 : index
    %c0_2 = arith.constant 0 : index
    %1 = vector.load %arg3[%c0_1, %c0_2] : memref<1x2xf32, #tpu.memory_space<vmem>>, vector<1x2xf32>
    %c0_3 = arith.constant 0 : index
    %c0_4 = arith.constant 0 : index
    %2 = vector.load %arg4[%c0_3, %c0_4] : memref<32x2xf32, #tpu.memory_space<vmem>>, vector<32x2xf32>
    %c0_5 = arith.constant 0 : index
    %c0_6 = arith.constant 0 : index
    %3 = vector.load %arg5[%c0_5, %c0_6] : memref<32x1xf32, #tpu.memory_space<vmem>>, vector<32x1xf32>
    %c0_7 = arith.constant 0 : index
    %c0_8 = arith.constant 0 : index
    %4 = vector.load %arg6[%c0_7, %c0_8] : memref<8x32xf32, #tpu.memory_space<vmem>>, vector<8x32xf32>
    %c0_9 = arith.constant 0 : index
    %c0_10 = arith.constant 0 : index
    %5 = vector.load %arg9[%c0_9, %c0_10] : memref<16x8xf32, #tpu.memory_space<vmem>>, vector<16x8xf32>
    %6 = vector.extract_strided_slice %5 {offsets = [0, 0], sizes = [14, 1], strides = [1, 1]} : vector<16x8xf32> to vector<14x1xf32>
    %7 = vector.extract_strided_slice %5 {offsets = [0, 1], sizes = [14, 1], strides = [1, 1]} : vector<16x8xf32> to vector<14x1xf32>
    %8 = vector.extract_strided_slice %5 {offsets = [0, 2], sizes = [14, 1], strides = [1, 1]} : vector<16x8xf32> to vector<14x1xf32>
    %9 = vector.extract_strided_slice %5 {offsets = [0, 3], sizes = [14, 1], strides = [1, 1]} : vector<16x8xf32> to vector<14x1xf32>
    %10 = vector.extract_strided_slice %5 {offsets = [0, 4], sizes = [14, 1], strides = [1, 1]} : vector<16x8xf32> to vector<14x1xf32>
    %11 = vector.extract_strided_slice %5 {offsets = [0, 5], sizes = [14, 1], strides = [1, 1]} : vector<16x8xf32> to vector<14x1xf32>
    %12 = vector.extract_strided_slice %5 {offsets = [0, 6], sizes = [14, 1], strides = [1, 1]} : vector<16x8xf32> to vector<14x1xf32>
    %c0_11 = arith.constant 0 : index
    %c0_12 = arith.constant 0 : index
    %13 = vector.load %arg7[%c0_11, %c0_12] : memref<8x256xf32, #tpu.memory_space<vmem>>, vector<1x256xf32>
    %c1 = arith.constant 1 : index
    %c0_13 = arith.constant 0 : index
    %14 = vector.load %arg7[%c1, %c0_13] : memref<8x256xf32, #tpu.memory_space<vmem>>, vector<1x256xf32>
    %c2 = arith.constant 2 : index
    %c0_14 = arith.constant 0 : index
    %15 = vector.load %arg7[%c2, %c0_14] : memref<8x256xf32, #tpu.memory_space<vmem>>, vector<1x256xf32>
    %c3 = arith.constant 3 : index
    %c0_15 = arith.constant 0 : index
    %16 = vector.load %arg7[%c3, %c0_15] : memref<8x256xf32, #tpu.memory_space<vmem>>, vector<1x256xf32>
    %c4 = arith.constant 4 : index
    %c0_16 = arith.constant 0 : index
    %17 = vector.load %arg7[%c4, %c0_16] : memref<8x256xf32, #tpu.memory_space<vmem>>, vector<1x256xf32>
    %c5 = arith.constant 5 : index
    %c0_17 = arith.constant 0 : index
    %18 = vector.load %arg7[%c5, %c0_17] : memref<8x256xf32, #tpu.memory_space<vmem>>, vector<1x256xf32>
    %c6 = arith.constant 6 : index
    %c0_18 = arith.constant 0 : index
    %19 = vector.load %arg7[%c6, %c0_18] : memref<8x256xf32, #tpu.memory_space<vmem>>, vector<1x256xf32>
    %c0_19 = arith.constant 0 : index
    %c0_20 = arith.constant 0 : index
    %20 = vector.load %arg8[%c0_19, %c0_20] : memref<8x256xf32, #tpu.memory_space<vmem>>, vector<1x256xf32>
    %c1_21 = arith.constant 1 : index
    %c0_22 = arith.constant 0 : index
    %21 = vector.load %arg8[%c1_21, %c0_22] : memref<8x256xf32, #tpu.memory_space<vmem>>, vector<1x256xf32>
    %c2_23 = arith.constant 2 : index
    %c0_24 = arith.constant 0 : index
    %22 = vector.load %arg8[%c2_23, %c0_24] : memref<8x256xf32, #tpu.memory_space<vmem>>, vector<1x256xf32>
    %c3_25 = arith.constant 3 : index
    %c0_26 = arith.constant 0 : index
    %23 = vector.load %arg8[%c3_25, %c0_26] : memref<8x256xf32, #tpu.memory_space<vmem>>, vector<1x256xf32>
    %c4_27 = arith.constant 4 : index
    %c0_28 = arith.constant 0 : index
    %24 = vector.load %arg8[%c4_27, %c0_28] : memref<8x256xf32, #tpu.memory_space<vmem>>, vector<1x256xf32>
    %c5_29 = arith.constant 5 : index
    %c0_30 = arith.constant 0 : index
    %25 = vector.load %arg8[%c5_29, %c0_30] : memref<8x256xf32, #tpu.memory_space<vmem>>, vector<1x256xf32>
    %c6_31 = arith.constant 6 : index
    %c0_32 = arith.constant 0 : index
    %26 = vector.load %arg8[%c6_31, %c0_32] : memref<8x256xf32, #tpu.memory_space<vmem>>, vector<1x256xf32>
    %c0_33 = arith.constant 0 : index
    %27 = memref.load %arg10[%c0_33] : memref<1xf32, #tpu.memory_space<smem>>
    %cst = arith.constant 3.906250e-03 : f32
    %c0_i32 = arith.constant 0 : i32
    %c2_i32 = arith.constant 2 : i32
    %28 = arith.addi %c0_i32, %c2_i32 : i32
    %c1_i32 = arith.constant 1 : i32
    scf.for %arg13 = %c0_i32 to %28 step %c1_i32  : i32 {
      %29 = arith.index_cast %arg13 : i32 to index
      %c0_35 = arith.constant 0 : index
      %c0_36 = arith.constant 0 : index
      %30 = vector.load %arg1[%29, %c0_35, %c0_36] : memref<2x32x256xf32, #tpu.memory_space<vmem>>, vector<1x32x256xf32>
      %31 = vector.shape_cast %30 : vector<1x32x256xf32> to vector<32x256xf32>
      %cst_37 = arith.constant dense<0.000000e+00> : vector<32xf32>
      %32 = vector.multi_reduction <add>, %31, %cst_37 [1] : vector<32x256xf32> to vector<32xf32>
      %33 = vector.shape_cast %32 : vector<32xf32> to vector<32x1xf32>
      %34 = vector.broadcast %cst : f32 to vector<32x1xf32>
      %35 = arith.mulf %33, %34 : vector<32x1xf32>
      %cst_38 = arith.constant dense<0xFF800000> : vector<32xf32>
      %36 = vector.multi_reduction <maximumf>, %31, %cst_38 [1] : vector<32x256xf32> to vector<32xf32>
      %37 = vector.shape_cast %36 : vector<32xf32> to vector<32x1xf32>
      %38 = vector.broadcast %35 : vector<32x1xf32> to vector<32x2xf32>
      %39 = arith.mulf %0, %38 : vector<32x2xf32>
      %cst_39 = arith.constant dense<0.000000e+00> : vector<2xf32>
      %40 = vector.multi_reduction <add>, %39, %cst_39 [0] : vector<32x2xf32> to vector<2xf32>
      %41 = vector.shape_cast %40 : vector<2xf32> to vector<1x2xf32>
      %42 = arith.addf %41, %1 : vector<1x2xf32>
      %cst_40 = arith.constant 0.000000e+00 : f32
      %43 = vector.broadcast %cst_40 : f32 to vector<1x2xf32>
      %44 = arith.maximumf %42, %43 : vector<1x2xf32>
      %45 = vector.broadcast %44 : vector<1x2xf32> to vector<32x2xf32>
      %46 = arith.mulf %2, %45 : vector<32x2xf32>
      %cst_41 = arith.constant dense<0.000000e+00> : vector<32xf32>
      %47 = vector.multi_reduction <add>, %46, %cst_41 [1] : vector<32x2xf32> to vector<32xf32>
      %48 = vector.shape_cast %47 : vector<32xf32> to vector<32x1xf32>
      %49 = arith.addf %48, %3 : vector<32x1xf32>
      %50 = vector.broadcast %37 : vector<32x1xf32> to vector<32x2xf32>
      %51 = arith.mulf %0, %50 : vector<32x2xf32>
      %cst_42 = arith.constant dense<0.000000e+00> : vector<2xf32>
      %52 = vector.multi_reduction <add>, %51, %cst_42 [0] : vector<32x2xf32> to vector<2xf32>
      %53 = vector.shape_cast %52 : vector<2xf32> to vector<1x2xf32>
      %54 = arith.addf %53, %1 : vector<1x2xf32>
      %cst_43 = arith.constant 0.000000e+00 : f32
      %55 = vector.broadcast %cst_43 : f32 to vector<1x2xf32>
      %56 = arith.maximumf %54, %55 : vector<1x2xf32>
      %57 = vector.broadcast %56 : vector<1x2xf32> to vector<32x2xf32>
      %58 = arith.mulf %2, %57 : vector<32x2xf32>
      %cst_44 = arith.constant dense<0.000000e+00> : vector<32xf32>
      %59 = vector.multi_reduction <add>, %58, %cst_44 [1] : vector<32x2xf32> to vector<32xf32>
      %60 = vector.shape_cast %59 : vector<32xf32> to vector<32x1xf32>
      %61 = arith.addf %60, %3 : vector<32x1xf32>
      %62 = arith.addf %49, %61 : vector<32x1xf32>
      %cst_45 = arith.constant 0.000000e+00 : f32
      %63 = vector.broadcast %cst_45 : f32 to vector<32x1xf32>
      %64 = arith.subf %63, %62 : vector<32x1xf32>
      %65 = math.exp %64 : vector<32x1xf32>
      %cst_46 = arith.constant 1.000000e+00 : f32
      %66 = vector.broadcast %cst_46 : f32 to vector<32x1xf32>
      %67 = arith.addf %66, %65 : vector<32x1xf32>
      %cst_47 = arith.constant 1.000000e+00 : f32
      %68 = vector.broadcast %cst_47 : f32 to vector<32x1xf32>
      %69 = arith.divf %68, %67 : vector<32x1xf32>
      %70 = vector.broadcast %69 : vector<32x1xf32> to vector<32x256xf32>
      %71 = arith.mulf %31, %70 : vector<32x256xf32>
      %cst_48 = arith.constant dense<0.000000e+00> : vector<8x256xf32>
      %72 = tpu.matmul %4, %71, %cst_48 {dimension_numbers = #tpu.dot_dimension_numbers<[1], [0], [0], [1], [0, 0, 1, 1], [], []>} : vector<8x32xf32>, vector<32x256xf32>, vector<8x256xf32> -> vector<8x256xf32>
      %73 = vector.extract_strided_slice %72 {offsets = [0, 0], sizes = [1, 256], strides = [1, 1]} : vector<8x256xf32> to vector<1x256xf32>
      %cst_49 = arith.constant dense<0xFF800000> : vector<256xf32>
      %74 = vector.multi_reduction <maximumf>, %71, %cst_49 [0] : vector<32x256xf32> to vector<256xf32>
      %75 = vector.shape_cast %74 : vector<256xf32> to vector<1x256xf32>
      %c14 = arith.constant 14 : index
      %c0_50 = arith.constant 0 : index
      %76 = vector.load %arg12[%c14, %c0_50] : memref<16x256xf32, #tpu.memory_space<vmem>>, vector<1x256xf32>
      tpu.vector_store %arg12[%c14, %c0_50], %73 {strides = array<i32>} : memref<16x256xf32, #tpu.memory_space<vmem>>, vector<1x256xf32>,
      %c15 = arith.constant 15 : index
      %c0_51 = arith.constant 0 : index
      %77 = vector.load %arg12[%c15, %c0_51] : memref<16x256xf32, #tpu.memory_space<vmem>>, vector<1x256xf32>
      tpu.vector_store %arg12[%c15, %c0_51], %75 {strides = array<i32>} : memref<16x256xf32, #tpu.memory_space<vmem>>, vector<1x256xf32>,
      %c14_52 = arith.constant 14 : index
      %c0_53 = arith.constant 0 : index
      %78 = vector.load %arg12[%c14_52, %c0_53] : memref<16x256xf32, #tpu.memory_space<vmem>>, vector<2x256xf32>
      %c48_i32 = arith.constant 48 : i32
      %79 = tpu.dynamic_rotate %78 by %c48_i32 dim 1 : vector<2x256xf32>, i32 -> vector<2x256xf32>
      %80 = vector.broadcast %13 : vector<1x256xf32> to vector<2x256xf32>
      %81 = arith.mulf %79, %80 : vector<2x256xf32>
      %c0_54 = arith.constant 0 : index
      %c0_55 = arith.constant 0 : index
      %82 = vector.load %arg12[%c0_54, %c0_55] : memref<16x256xf32, #tpu.memory_space<vmem>>, vector<2x256xf32>
      tpu.vector_store %arg12[%c0_54, %c0_55], %81 {strides = array<i32>} : memref<16x256xf32, #tpu.memory_space<vmem>>, vector<2x256xf32>,
      %c32_i32 = arith.constant 32 : i32
      %83 = tpu.dynamic_rotate %78 by %c32_i32 dim 1 : vector<2x256xf32>, i32 -> vector<2x256xf32>
      %84 = vector.broadcast %14 : vector<1x256xf32> to vector<2x256xf32>
      %85 = arith.mulf %83, %84 : vector<2x256xf32>
      %c2_56 = arith.constant 2 : index
      %c0_57 = arith.constant 0 : index
      %86 = vector.load %arg12[%c2_56, %c0_57] : memref<16x256xf32, #tpu.memory_space<vmem>>, vector<2x256xf32>
      tpu.vector_store %arg12[%c2_56, %c0_57], %85 {strides = array<i32>} : memref<16x256xf32, #tpu.memory_space<vmem>>, vector<2x256xf32>,
      %c16_i32 = arith.constant 16 : i32
      %87 = tpu.dynamic_rotate %78 by %c16_i32 dim 1 : vector<2x256xf32>, i32 -> vector<2x256xf32>
      %88 = vector.broadcast %15 : vector<1x256xf32> to vector<2x256xf32>
      %89 = arith.mulf %87, %88 : vector<2x256xf32>
      %c4_58 = arith.constant 4 : index
      %c0_59 = arith.constant 0 : index
      %90 = vector.load %arg12[%c4_58, %c0_59] : memref<16x256xf32, #tpu.memory_space<vmem>>, vector<2x256xf32>
      tpu.vector_store %arg12[%c4_58, %c0_59], %89 {strides = array<i32>} : memref<16x256xf32, #tpu.memory_space<vmem>>, vector<2x256xf32>,
      %91 = vector.broadcast %16 : vector<1x256xf32> to vector<2x256xf32>
      %92 = arith.mulf %78, %91 : vector<2x256xf32>
      %c6_60 = arith.constant 6 : index
      %c0_61 = arith.constant 0 : index
      %93 = vector.load %arg12[%c6_60, %c0_61] : memref<16x256xf32, #tpu.memory_space<vmem>>, vector<2x256xf32>
      tpu.vector_store %arg12[%c6_60, %c0_61], %92 {strides = array<i32>} : memref<16x256xf32, #tpu.memory_space<vmem>>, vector<2x256xf32>,
      %c240_i32 = arith.constant 240 : i32
      %94 = tpu.dynamic_rotate %78 by %c240_i32 dim 1 : vector<2x256xf32>, i32 -> vector<2x256xf32>
      %95 = vector.broadcast %17 : vector<1x256xf32> to vector<2x256xf32>
      %96 = arith.mulf %94, %95 : vector<2x256xf32>
      %c8 = arith.constant 8 : index
      %c0_62 = arith.constant 0 : index
      %97 = vector.load %arg12[%c8, %c0_62] : memref<16x256xf32, #tpu.memory_space<vmem>>, vector<2x256xf32>
      tpu.vector_store %arg12[%c8, %c0_62], %96 {strides = array<i32>} : memref<16x256xf32, #tpu.memory_space<vmem>>, vector<2x256xf32>,
      %c224_i32 = arith.constant 224 : i32
      %98 = tpu.dynamic_rotate %78 by %c224_i32 dim 1 : vector<2x256xf32>, i32 -> vector<2x256xf32>
      %99 = vector.broadcast %18 : vector<1x256xf32> to vector<2x256xf32>
      %100 = arith.mulf %98, %99 : vector<2x256xf32>
      %c10 = arith.constant 10 : index
      %c0_63 = arith.constant 0 : index
      %101 = vector.load %arg12[%c10, %c0_63] : memref<16x256xf32, #tpu.memory_space<vmem>>, vector<2x256xf32>
      tpu.vector_store %arg12[%c10, %c0_63], %100 {strides = array<i32>} : memref<16x256xf32, #tpu.memory_space<vmem>>, vector<2x256xf32>,
      %c208_i32 = arith.constant 208 : i32
      %102 = tpu.dynamic_rotate %78 by %c208_i32 dim 1 : vector<2x256xf32>, i32 -> vector<2x256xf32>
      %103 = vector.broadcast %19 : vector<1x256xf32> to vector<2x256xf32>
      %104 = arith.mulf %102, %103 : vector<2x256xf32>
      %c12 = arith.constant 12 : index
      %c0_64 = arith.constant 0 : index
      %105 = vector.load %arg12[%c12, %c0_64] : memref<16x256xf32, #tpu.memory_space<vmem>>, vector<2x256xf32>
      tpu.vector_store %arg12[%c12, %c0_64], %104 {strides = array<i32>} : memref<16x256xf32, #tpu.memory_space<vmem>>, vector<2x256xf32>,
      %c0_65 = arith.constant 0 : index
      %c0_66 = arith.constant 0 : index
      %106 = vector.load %arg12[%c0_65, %c0_66] : memref<16x256xf32, #tpu.memory_space<vmem>>, vector<14x256xf32>
      %cst_67 = arith.constant 0.000000e+00 : f32
      %107 = vector.broadcast %cst_67 : f32 to vector<1x256xf32>
      %108 = vector.broadcast %6 : vector<14x1xf32> to vector<14x256xf32>
      %109 = arith.mulf %106, %108 : vector<14x256xf32>
      %cst_68 = arith.constant dense<0.000000e+00> : vector<256xf32>
      %110 = vector.multi_reduction <add>, %109, %cst_68 [0] : vector<14x256xf32> to vector<256xf32>
      %111 = vector.shape_cast %110 : vector<256xf32> to vector<1x256xf32>
      %c3_i32 = arith.constant 3 : i32
      %112 = tpu.dynamic_rotate %111 by %c3_i32 dim 1 : vector<1x256xf32>, i32 -> vector<1x256xf32>
      %113 = arith.mulf %20, %112 : vector<1x256xf32>
      %114 = arith.addf %107, %113 : vector<1x256xf32>
      %115 = vector.broadcast %7 : vector<14x1xf32> to vector<14x256xf32>
      %116 = arith.mulf %106, %115 : vector<14x256xf32>
      %cst_69 = arith.constant dense<0.000000e+00> : vector<256xf32>
      %117 = vector.multi_reduction <add>, %116, %cst_69 [0] : vector<14x256xf32> to vector<256xf32>
      %118 = vector.shape_cast %117 : vector<256xf32> to vector<1x256xf32>
      %c2_i32_70 = arith.constant 2 : i32
      %119 = tpu.dynamic_rotate %118 by %c2_i32_70 dim 1 : vector<1x256xf32>, i32 -> vector<1x256xf32>
      %120 = arith.mulf %21, %119 : vector<1x256xf32>
      %121 = arith.addf %114, %120 : vector<1x256xf32>
      %122 = vector.broadcast %8 : vector<14x1xf32> to vector<14x256xf32>
      %123 = arith.mulf %106, %122 : vector<14x256xf32>
      %cst_71 = arith.constant dense<0.000000e+00> : vector<256xf32>
      %124 = vector.multi_reduction <add>, %123, %cst_71 [0] : vector<14x256xf32> to vector<256xf32>
      %125 = vector.shape_cast %124 : vector<256xf32> to vector<1x256xf32>
      %c1_i32_72 = arith.constant 1 : i32
      %126 = tpu.dynamic_rotate %125 by %c1_i32_72 dim 1 : vector<1x256xf32>, i32 -> vector<1x256xf32>
      %127 = arith.mulf %22, %126 : vector<1x256xf32>
      %128 = arith.addf %121, %127 : vector<1x256xf32>
      %129 = vector.broadcast %9 : vector<14x1xf32> to vector<14x256xf32>
      %130 = arith.mulf %106, %129 : vector<14x256xf32>
      %cst_73 = arith.constant dense<0.000000e+00> : vector<256xf32>
      %131 = vector.multi_reduction <add>, %130, %cst_73 [0] : vector<14x256xf32> to vector<256xf32>
      %132 = vector.shape_cast %131 : vector<256xf32> to vector<1x256xf32>
      %133 = arith.mulf %23, %132 : vector<1x256xf32>
      %134 = arith.addf %128, %133 : vector<1x256xf32>
      %135 = vector.broadcast %10 : vector<14x1xf32> to vector<14x256xf32>
      %136 = arith.mulf %106, %135 : vector<14x256xf32>
      %cst_74 = arith.constant dense<0.000000e+00> : vector<256xf32>
      %137 = vector.multi_reduction <add>, %136, %cst_74 [0] : vector<14x256xf32> to vector<256xf32>
      %138 = vector.shape_cast %137 : vector<256xf32> to vector<1x256xf32>
      %c255_i32 = arith.constant 255 : i32
      %139 = tpu.dynamic_rotate %138 by %c255_i32 dim 1 : vector<1x256xf32>, i32 -> vector<1x256xf32>
      %140 = arith.mulf %24, %139 : vector<1x256xf32>
      %141 = arith.addf %134, %140 : vector<1x256xf32>
      %142 = vector.broadcast %11 : vector<14x1xf32> to vector<14x256xf32>
      %143 = arith.mulf %106, %142 : vector<14x256xf32>
      %cst_75 = arith.constant dense<0.000000e+00> : vector<256xf32>
      %144 = vector.multi_reduction <add>, %143, %cst_75 [0] : vector<14x256xf32> to vector<256xf32>
      %145 = vector.shape_cast %144 : vector<256xf32> to vector<1x256xf32>
      %c254_i32 = arith.constant 254 : i32
      %146 = tpu.dynamic_rotate %145 by %c254_i32 dim 1 : vector<1x256xf32>, i32 -> vector<1x256xf32>
      %147 = arith.mulf %25, %146 : vector<1x256xf32>
      %148 = arith.addf %141, %147 : vector<1x256xf32>
      %149 = vector.broadcast %12 : vector<14x1xf32> to vector<14x256xf32>
      %150 = arith.mulf %106, %149 : vector<14x256xf32>
      %cst_76 = arith.constant dense<0.000000e+00> : vector<256xf32>
      %151 = vector.multi_reduction <add>, %150, %cst_76 [0] : vector<14x256xf32> to vector<256xf32>
      %152 = vector.shape_cast %151 : vector<256xf32> to vector<1x256xf32>
      %c253_i32 = arith.constant 253 : i32
      %153 = tpu.dynamic_rotate %152 by %c253_i32 dim 1 : vector<1x256xf32>, i32 -> vector<1x256xf32>
      %154 = arith.mulf %26, %153 : vector<1x256xf32>
      %155 = arith.addf %148, %154 : vector<1x256xf32>
      %156 = vector.broadcast %27 : f32 to vector<1x256xf32>
      %157 = arith.addf %155, %156 : vector<1x256xf32>
      %cst_77 = arith.constant 0.000000e+00 : f32
      %158 = vector.broadcast %cst_77 : f32 to vector<1x256xf32>
      %159 = arith.subf %158, %157 : vector<1x256xf32>
      %160 = math.exp %159 : vector<1x256xf32>
      %cst_78 = arith.constant 1.000000e+00 : f32
      %161 = vector.broadcast %cst_78 : f32 to vector<1x256xf32>
      %162 = arith.addf %161, %160 : vector<1x256xf32>
      %cst_79 = arith.constant 1.000000e+00 : f32
      %163 = vector.broadcast %cst_79 : f32 to vector<1x256xf32>
      %164 = arith.divf %163, %162 : vector<1x256xf32>
      %165 = vector.broadcast %164 : vector<1x256xf32> to vector<32x256xf32>
      %166 = arith.mulf %71, %165 : vector<32x256xf32>
      %167 = arith.index_cast %arg13 : i32 to index
      %c0_80 = arith.constant 0 : index
      %c0_81 = arith.constant 0 : index
      %168 = vector.load %arg11[%167, %c0_80, %c0_81] : memref<2x32x256xf32, #tpu.memory_space<vmem>>, vector<1x32x256xf32>
      %169 = vector.shape_cast %168 : vector<1x32x256xf32> to vector<32x256xf32>
      %170 = vector.shape_cast %166 : vector<32x256xf32> to vector<1x32x256xf32>
      tpu.vector_store %arg11[%167, %c0_80, %c0_81], %170 {strides = array<i32>} : memref<2x32x256xf32, #tpu.memory_space<vmem>>, vector<1x32x256xf32>,
    }
    %c2_i32_34 = arith.constant 2 : i32
    return
  }
  func.func @transform_0(%arg0: i32) -> (i32, i32, i32) {
    %c0_i32 = arith.constant 0 : i32
    %c0_i32_0 = arith.constant 0 : i32
    %c0_i32_1 = arith.constant 0 : i32
    return %arg0, %c0_i32, %c0_i32_0 : i32, i32, i32
  }
  func.func @transform_1(%arg0: i32) -> (i32, i32) {
    %c0_i32 = arith.constant 0 : i32
    %c0_i32_0 = arith.constant 0 : i32
    %c0_i32_1 = arith.constant 0 : i32
    return %c0_i32, %c0_i32_0 : i32, i32
  }
  func.func @transform_2(%arg0: i32) -> (i32, i32) {
    %c0_i32 = arith.constant 0 : i32
    %c0_i32_0 = arith.constant 0 : i32
    %c0_i32_1 = arith.constant 0 : i32
    return %c0_i32, %c0_i32_0 : i32, i32
  }
  func.func @transform_3(%arg0: i32) -> (i32, i32) {
    %c0_i32 = arith.constant 0 : i32
    %c0_i32_0 = arith.constant 0 : i32
    %c0_i32_1 = arith.constant 0 : i32
    return %c0_i32, %c0_i32_0 : i32, i32
  }
  func.func @transform_4(%arg0: i32) -> (i32, i32) {
    %c0_i32 = arith.constant 0 : i32
    %c0_i32_0 = arith.constant 0 : i32
    %c0_i32_1 = arith.constant 0 : i32
    return %c0_i32, %c0_i32_0 : i32, i32
  }
  func.func @transform_5(%arg0: i32) -> (i32, i32) {
    %c0_i32 = arith.constant 0 : i32
    %c0_i32_0 = arith.constant 0 : i32
    %c0_i32_1 = arith.constant 0 : i32
    return %c0_i32, %c0_i32_0 : i32, i32
  }
  func.func @transform_6(%arg0: i32) -> (i32, i32) {
    %c0_i32 = arith.constant 0 : i32
    %c0_i32_0 = arith.constant 0 : i32
    %c0_i32_1 = arith.constant 0 : i32
    return %c0_i32, %c0_i32_0 : i32, i32
  }
  func.func @transform_7(%arg0: i32) -> (i32, i32) {
    %c0_i32 = arith.constant 0 : i32
    %c0_i32_0 = arith.constant 0 : i32
    %c0_i32_1 = arith.constant 0 : i32
    return %c0_i32, %c0_i32_0 : i32, i32
  }
  func.func @transform_8(%arg0: i32) -> (i32, i32) {
    %c0_i32 = arith.constant 0 : i32
    %c0_i32_0 = arith.constant 0 : i32
    %c0_i32_1 = arith.constant 0 : i32
    return %c0_i32, %c0_i32_0 : i32, i32
  }
  func.func @transform_9(%arg0: i32) -> i32 {
    %c0_i32 = arith.constant 0 : i32
    %c0_i32_0 = arith.constant 0 : i32
    return %c0_i32 : i32
  }
  func.func @transform_10(%arg0: i32) -> (i32, i32, i32) {
    %c0_i32 = arith.constant 0 : i32
    %c0_i32_0 = arith.constant 0 : i32
    %c0_i32_1 = arith.constant 0 : i32
    return %arg0, %c0_i32, %c0_i32_0 : i32, i32, i32
  }
}

</mosaic_0001>

<bundles_post_ra>
// kernel: tpu_custom_call.1
= control target key start
LH: loop header
LB: loop body
LE: loop exit
PB: predicated region body
PF: predicated region fallthrough
CT: control target
= control target key end

     0   :  { %16 = vsyncpa [#allocation5], 0  ;;  %s1582_s0 = inlined_call_operand.hbm [shape: f32[2,32,256], index: 0, kind: input, shape index: {}]   ;;  %s1583_s1 = inlined_call_operand.vmem [shape: f32[32,2], index: 1, kind: input, shape index: {}]   ;;  %s1584_s2 = inlined_call_operand.vmem [shape: f32[1,2], index: 2, kind: input, shape index: {}]   ;;  %s1585_s3 = inlined_call_operand.vmem [shape: f32[32,2], index: 3, kind: input, shape index: {}]   ;;  %s1586_s4 = inlined_call_operand.vmem [shape: f32[32,1], index: 4, kind: input, shape index: {}]   ;;  %s1587_s5 = inlined_call_operand.vmem [shape: f32[8,32], index: 5, kind: input, shape index: {}]   ;;  %s1588_s6 = inlined_call_operand.vmem [shape: f32[8,256], index: 6, kind: input, shape index: {}]   ;;  %s1589_s7 = inlined_call_operand.vmem [shape: f32[8,256], index: 7, kind: input, shape index: {}]   ;;  %s1590_s8 = inlined_call_operand.vmem [shape: f32[16,8], index: 8, kind: input, shape index: {}]   ;;  %s1591_s9 = inlined_call_operand.<no memory space> [shape: f32[1], index: 9, kind: input, shape index: {}]   ;;  %s1592_s10 = inlined_call_operand.hbm [shape: f32[2,32,256], index: 10, kind: output, shape index: {}]  }
   0x1   :  { %17 = vsyncpa [#allocation6], 0  ;;  %s22_s15 = sshll.u32 %s1582_s0, 4  ;;  %s1063_s16 = smov [#allocation4]   ;;  %s23_s15 = int_to_ptr.hbm [resolvable:$true] %s22_s15 }
   0x2   :  { %s24_s17 = sshll.u32 %s1063_s16, 4  ;;  %s1064_s18 = smov 256   ;;  %s25_s17 = int_to_ptr.vmem [resolvable:$true] %s24_s17 }
   0x3   :  { %s1065_s19 = smov 16  }
   0x4   :  { %30 = dma.hbm_to_vmem [thread:$0]  %s23_s15, 2048, %s25_s17, [#allocation5], %s1064_s18, %s1064_s18, %s1065_s19  }
   0x5   :  { %1055 = dma.done.wait [#allocation5], 2048  }
   0x6   :  { %1056 = vsyncadd [#allocation5], 4294965248  ;;  %v1150_v0 = vld [vmem:[%s1583_s1] sm:$0xff]  ;;  %v1155_v1 = vld [vmem:[%s1583_s1 + $0x8] sm:$0xff] }
   0x7   :  { %1609 = vst [vmem:[#allocation10_spill] sm:$0xff] %v1150_v0  ;;  %v1160_v2 = vld [vmem:[%s1583_s1 + $0x10] sm:$0xff]  ;;  %v1165_v3 = vld [vmem:[%s1583_s1 + $0x18] sm:$0xff]  ;;  %v1170_v4 = vld [vmem:[%s1584_s2] sm:$0x1] }
   0x8   :  { %1610 = vst [vmem:[#allocation11_spill] sm:$0xff] %v1155_v1  ;;  %v1175_v5 = vld [vmem:[%s1585_s3] sm:$0xff]  ;;  %v1180_v6 = vld [vmem:[%s1585_s3 + $0x8] sm:$0xff]  ;;  %v1185_v7 = vld [vmem:[%s1585_s3 + $0x10] sm:$0xff] }
   0x9   :  { %1611 = vst [vmem:[#allocation12_spill] sm:$0xff] %v1160_v2  ;;  %v1190_v8 = vld [vmem:[%s1585_s3 + $0x18] sm:$0xff]  ;;  %v1195_v9 = vld [vmem:[%s1586_s4] sm:$0xff]  ;;  %v1200_v10 = vld [vmem:[%s1586_s4 + $0x8] sm:$0xff] }
   0xa   :  { %1612 = vst [vmem:[#allocation13_spill] sm:$0xff] %v1165_v3  ;;  %v1205_v11 = vld [vmem:[%s1586_s4 + $0x10] sm:$0xff]  ;;  %v1210_v12 = vld [vmem:[%s1586_s4 + $0x18] sm:$0xff]  ;;  %v1215_v13 = vld [vmem:[%s1587_s5] sm:$0xff]  ;;  %s1297_s4 = smov 0  }
   0xb   :  { %1613 = vst [vmem:[#allocation14_spill] sm:$0xff] %v1170_v4  ;;  %v1220_v14 = vld [vmem:[%s1590_s8] sm:$0xff]  ;;  %v1225_v15 = vld [vmem:[%s1590_s8 + $0x8] sm:$0xff] }
   0xc   :  { %1614 = vst [vmem:[#allocation15_spill] sm:$0xff] %v1175_v5  ;;  %v1230_v16 = vld [vmem:[%s1588_s6] ss:$8 sm:$0x3] }
   0xd   :  { %1615 = vst [vmem:[#allocation16_spill] sm:$0xff] %v1180_v6  ;;  %v1235_v17 = vld [vmem:[%s1588_s6 + $0x1] ss:$8 sm:$0x3] }
   0xe   :  { %1616 = vst [vmem:[#allocation17_spill] sm:$0xff] %v1185_v7  ;;  %v1240_v18 = vld [vmem:[%s1588_s6 + $0x2] ss:$8 sm:$0x3] }
   0xf   :  { %1617 = vst [vmem:[#allocation18_spill] sm:$0xff] %v1190_v8  ;;  %v1245_v19 = vld [vmem:[%s1588_s6 + $0x3] ss:$8 sm:$0x3] }
  0x10   :  { %1618 = vst [vmem:[#allocation19_spill] sm:$0xff] %v1195_v9  ;;  %v1250_v20 = vld [vmem:[%s1588_s6 + $0x4] ss:$8 sm:$0x3] }
  0x11   :  { %1619 = vst [vmem:[#allocation20_spill] sm:$0xff] %v1200_v10  ;;  %v1255_v21 = vld [vmem:[%s1588_s6 + $0x5] ss:$8 sm:$0x3] }
  0x12   :  { %1620 = vst [vmem:[#allocation21_spill] sm:$0xff] %v1205_v11  ;;  %v1260_v22 = vld [vmem:[%s1588_s6 + $0x6] ss:$8 sm:$0x3] }
  0x13   :  { %1621 = vst [vmem:[#allocation22_spill] sm:$0xff] %v1210_v12  ;;  %v1265_v23 = vld [vmem:[%s1589_s7] ss:$8 sm:$0x3] }
  0x14   :  { %1622 = vst [vmem:[#allocation23_spill] sm:$0xff] %v1215_v13  ;;  %v1270_v24 = vld [vmem:[%s1589_s7 + $0x1] ss:$8 sm:$0x3] }
  0x15   :  { %1623 = vst [vmem:[#allocation24_spill] sm:$0xff] %v1220_v14  ;;  %v1275_v25 = vld [vmem:[%s1589_s7 + $0x2] ss:$8 sm:$0x3] }
  0x16   :  { %1624 = vst [vmem:[#allocation25_spill] sm:$0xff] %v1225_v15  ;;  %v1280_v26 = vld [vmem:[%s1589_s7 + $0x3] ss:$8 sm:$0x3] }
  0x17   :  { %v1285_v27 = vld [vmem:[%s1589_s7 + $0x4] ss:$8 sm:$0x3]  ;;  %v1290_v28 = vld [vmem:[%s1589_s7 + $0x5] ss:$8 sm:$0x3] }
  0x18   :  { %v1295_v29 = vld [vmem:[%s1589_s7 + $0x6] ss:$8 sm:$0x3] }
  0x19 LB: > { %v1629_v11 = vld [vmem:[#allocation21_spill] sm:$0xff]  ;;  %v1630_v10 = vld [vmem:[#allocation20_spill] sm:$0xff]  ;;  %v1631_v9 = vld [vmem:[#allocation19_spill] sm:$0xff]  ;;  %s935_s11 = sshll.u32 %s1061_s4, 6  ;;  %vm145_vm0 = vcmask 15360   ;;  %s1069_s7 = smov 32   ;;  %s1061_s4 = sphi %s1297_s4, %s101_s4  }
  0x1a   : > { %v1628_v12 = vld [vmem:[#allocation22_spill] sm:$0xff]  ;;  %v1633_v7 = vld [vmem:[#allocation17_spill] sm:$0xff]  ;;  %v1634_v6 = vld [vmem:[#allocation16_spill] sm:$0xff]  ;;  %s104_s5 = scalar_lea.vmem [#allocation4], %s935_s11  ;;  %s1070_s12 = smov 96  }
  0x1b   : > { %v1627_v13 = vld [vmem:[#allocation23_spill] sm:$0xff]  ;;  %v1632_v8 = vld [vmem:[#allocation18_spill] sm:$0xff]  ;;  %v1637_v3 = vld [vmem:[#allocation13_spill] sm:$0xff]  ;;  %s1072_s13 = smov 80   ;;  %s1073_s14 = smov 112  }
  0x1c   : > { %v1626_v14 = vld [vmem:[#allocation24_spill] sm:$0xff]  ;;  %v1635_v5 = vld [vmem:[#allocation15_spill] sm:$0xff]  ;;  %v1636_v4 = vld [vmem:[#allocation14_spill] sm:$0xff]  ;;  %s1074_s8 = smov 48   ;;  %s1075_s1 = smov 16  }
  0x1d   : > { %v1625_v15 = vld [vmem:[#allocation25_spill] sm:$0xff]  ;;  %v1638_v2 = vld [vmem:[#allocation12_spill] sm:$0xff]  ;;  %v1639_v1 = vld [vmem:[#allocation11_spill] sm:$0xff]  ;;  %s1079_s15 = smov 2   ;;  %s1080_s2 = smov 3  }
  0x1e   : > { %v1640_v0 = vld [vmem:[#allocation10_spill] sm:$0xff]  ;;  %v1307_v31 = vld [vmem:[%s104_s5 + $0x8] sm:$0xff]  ;;  %v1315_v35 = vld [vmem:[%s104_s5 + $0x10] sm:$0xff]  ;;  %s1081_s16 = smov 1   ;;  %s1082_s17 = smov 127  }
  0x1f   : > { %v1305_v30 = vld [vmem:[%s104_s5] sm:$0xff]  ;;  %v1313_v34 = vld [vmem:[%s104_s5 + $0x28] sm:$0xff]  ;;  %v1317_v36 = vld [vmem:[%s104_s5 + $0x18] sm:$0xff]  ;;  %s1083_s20 = smov 126   ;;  %s1084_s21 = smov 125  }
  0x20   : > { %v1309_v32 = vld [vmem:[%s104_s5 + $0x20] sm:$0xff]  ;;  %v113_v33 = vadd.f32 %v1307_v31, %v1305_v30  ;;  %v132_v38 = vmax.f32 %v1315_v35, %v1317_v36  ;;  %v1323_v39 = vld [vmem:[%s104_s5 + $0x30] sm:$0xff]  ;;  %v1325_v40 = vld [vmem:[%s104_s5 + $0x38] sm:$0xff]  ;;  %v116_v41 = vadd.f32 %v1317_v36, %v1315_v35  ;;  %v129_v42 = vmax.f32 %v1305_v30, %v1307_v31  ;;  %s881_s0 = scalar_lea.vmem [#allocation7], %s935_s11  ;;  %s101_s4 = sadd.s32 1, %s1061_s4  }
  0x21   : > { %v119_v37 = vadd.f32 %v1313_v34, %v1309_v32  ;;  %v122_v43 = vadd.f32 %v1325_v40, %v1323_v39  ;;  %v135_v44 = vmax.f32 %v1309_v32, %v1313_v34  ;;  %v138_v45 = vmax.f32 %v1323_v39, %v1325_v40  ;;  %p98_p0 = scmp.ge.s32.totalorder %s101_s4, 2  }
  0x22   : > { %114 = vadd.xlane.f32.xlu0 %v113_v33  ;;  %133 = vmax.xlane.f32.xlu2 %v132_v38  ;;  %s896_s25 = sshll.u32 (%p98_p0), %s1592_s10, 4  ;;  %s1085_s6 = smov (%p98_p0), [#allocation7]   ;;  %s897_s25 = int_to_ptr.hbm [resolvable:$true] %s896_s25 }
  0x23   : > { %120 = vadd.xlane.f32.xlu1 %v119_v37  ;;  %s894_s26 = sshll.u32 (%p98_p0), %s1085_s6, 4  ;;  %s895_s26 = int_to_ptr.vmem [resolvable:$true] %s894_s26 }
  0x2a   : > { %117 = vadd.xlane.f32.xlu0 %v116_v41  ;;  %123 = vadd.xlane.f32.xlu2 %v122_v43 }
  0x2b   : > { %130 = vmax.xlane.f32.xlu1 %v129_v42 }
  0x32   : > { %136 = vmax.xlane.f32.xlu0 %v135_v44 }
  0x33   : > { %139 = vmax.xlane.f32.xlu1 %v138_v45 }
  0x95   : > { %v115_v46 = vpop.xlane.xlu0 %114  ;;  %v134_v48 = vpop.xlane.xlu2 %133 }
  0x96   : > { %v121_v47 = vpop.xlane.xlu1 %120  ;;  %v125_v49 = vmul.f32 0.00390625, %v115_v46  ;;  %v183_v58 = vmul.f32 %v134_v48, %v1639_v1 }
  0x97   : > { %v127_v50 = vmul.f32 0.00390625, %v121_v47 }
  0x98   : > { %v141_v52 = vmul.f32 %v125_v49, %v1640_v0  ;;  %v187_v38 = vsel %vm145_vm0, %v183_v58, 0.0 }
  0x99   : > { %v143_v57 = vmul.f32 %v127_v50, %v1638_v2 }
  0x9a   : > { %v146_v62 = vsel %vm145_vm0, %v141_v52, 0.0 }
  0x9b   : > { %v149_v37 = vsel %vm145_vm0, %v143_v57, 0.0 }
  0x9d   : > { %v118_v51 = vpop.xlane.xlu0 %117  ;;  %v124_v55 = vpop.xlane.xlu2 %123 }
  0x9e   : > { %v126_v53 = vmul.f32 0.00390625, %v118_v51  ;;  %v131_v54 = vpop.xlane.xlu1 %130  ;;  %v128_v56 = vmul.f32 0.00390625, %v124_v55 }
  0x9f   : > { %v182_v60 = vmul.f32 %v131_v54, %v1640_v0  ;;  %v447_v0 = vperm.slane %v1235_v17, 0 }
  0xa0   : > { %v142_v59 = vmul.f32 %v126_v53, %v1639_v1  ;;  %v144_v61 = vmul.f32 %v128_v56, %v1637_v3 }
  0xa1   : > { %v186_v41 = vsel %vm145_vm0, %v182_v60, 0.0 }
  0xa2   : > { %v147_v63 = vsel %vm145_vm0, %v142_v59, 0.0  ;;  %v151_v42 = vsel %vm145_vm0, %v144_v61, 0.0  ;;  %v188_v47 = vadd.f32 %v187_v38, %v186_v41 }
  0xa3   : > { %v148_v33 = vadd.f32 %v147_v63, %v146_v62 }
  0xa5   : > { %v150_v43 = vadd.f32 %v149_v37, %v148_v33  ;;  %v137_v44 = vpop.xlane.xlu0 %136 }
  0xa6   : > { %v184_v45 = vmul.f32 %v137_v44, %v1638_v2  ;;  %v140_v46 = vpop.xlane.xlu1 %139 }
  0xa7   : > { %v152_v48 = vadd.f32 %v151_v42, %v150_v43  ;;  %v185_v49 = vmul.f32 %v140_v46, %v1637_v3 }
  0xa8   : > { %v189_v50 = vsel %vm145_vm0, %v184_v45, 0.0 }
  0xa9   : > { %v153_v51 = vrot.slane %v152_v48, 4  ;;  %v190_v52 = vadd.f32 %v189_v50, %v188_v47  ;;  %v191_v53 = vsel %vm145_vm0, %v185_v49, 0.0 }
  0xab   : > { %v154_v54 = vadd.f32 %v153_v51, %v152_v48  ;;  %v192_v55 = vadd.f32 %v191_v53, %v190_v52 }
  0xad   : > { %v155_v56 = vrot.slane %v154_v54, 2  ;;  %v193_v57 = vrot.slane %v192_v55, 4 }
  0xaf   : > { %v156_v58 = vadd.f32 %v155_v56, %v154_v54  ;;  %v194_v59 = vadd.f32 %v193_v57, %v192_v55 }
  0xb1   : > { %v157_v60 = vrot.slane %v156_v58, 1  ;;  %v195_v61 = vrot.slane %v194_v59, 2 }
  0xb3   : > { %v158_v62 = vadd.f32 %v157_v60, %v156_v58  ;;  %v196_v63 = vadd.f32 %v195_v61, %v194_v59 }
  0xb5   : > { %v159_v33 = vadd.f32 %v158_v62, %v1636_v4  ;;  %v197_v37 = vrot.slane %v196_v63, 1 }
  0xb7   : > { %v198_v38 = vadd.f32 %v197_v37, %v196_v63  ;;  %v160_v41 = vmax.f32 %v159_v33, 0.0 }
  0xb9   : > { %v199_v42 = vadd.f32 %v198_v38, %v1636_v4  ;;  %v161_v43 = vperm.slane %v160_v41, 0 }
  0xbb   : > { %v200_v44 = vmax.f32 %v199_v42, 0.0  ;;  %v164_v45 = vmul.f32 %v161_v43, %v1633_v7  ;;  %v163_v54 = vmul.f32 %v161_v43, %v1634_v6  ;;  %v165_v55 = vmul.f32 %v161_v43, %v1632_v8 }
  0xbc   : > { %v162_v58 = vmul.f32 %v161_v43, %v1635_v5  ;;  %v1066_v42 = vmov 0  }
  0xbd   : > { %v172_v46 = vsel %vm145_vm0, %v164_v45, 0.0  ;;  %v201_v47 = vperm.slane %v200_v44, 0  ;;  %v169_v56 = vsel %vm145_vm0, %v163_v54, 0.0  ;;  %v175_v57 = vsel %vm145_vm0, %v165_v55, 0.0  ;;  %969 = vset.pattern.permute.xlu2 %v1066_v42  ;;  %970 = vset.pattern.permute.xlu0 %v1066_v42 }
  0xbe   : > { %173 = vadd.xlane.f32.xlu1 %v172_v46  ;;  %v166_v60 = vsel %vm145_vm0, %v162_v58, 0.0 }
  0xbf   : > { %v205_v48 = vmul.f32 %v201_v47, %v1632_v8  ;;  %v204_v49 = vmul.f32 %v201_v47, %v1633_v7  ;;  %v203_v52 = vmul.f32 %v201_v47, %v1634_v6  ;;  %v202_v59 = vmul.f32 %v201_v47, %v1635_v5  ;;  %968 = vset.pattern.permute.xlu1 %v1066_v42 }
  0xc1   : > { %v215_v50 = vsel %vm145_vm0, %v205_v48, 0.0  ;;  %v212_v51 = vsel %vm145_vm0, %v204_v49, 0.0  ;;  %v209_v53 = vsel %vm145_vm0, %v203_v52, 0.0  ;;  %v206_v61 = vsel %vm145_vm0, %v202_v59, 0.0 }
  0xc2   : > { %216 = vadd.xlane.f32.xlu0 %v215_v50  ;;  %213 = vadd.xlane.f32.xlu2 %v212_v51 }
  0xc6   : > { %210 = vadd.xlane.f32.xlu1 %v209_v53 }
  0xca   : > { %170 = vadd.xlane.f32.xlu0 %v169_v56  ;;  %176 = vadd.xlane.f32.xlu2 %v175_v57 }
  0xd2   : > { %167 = vadd.xlane.f32.xlu2 %v166_v60  ;;  %207 = vadd.xlane.f32.xlu0 %v206_v61 }
 0x131   : > { %v174_v62 = vpop.xlane.xlu1 %173 }
 0x132   : > { %v180_v37 = vadd.f32 %v174_v62, %v1629_v11 }
 0x135   : > { %v217_v63 = vpop.xlane.xlu0 %216  ;;  %v214_v33 = vpop.xlane.xlu2 %213 }
 0x136   : > { %v220_v38 = vadd.f32 %v214_v33, %v1629_v11  ;;  %v221_v46 = vadd.f32 %v217_v63, %v1628_v12 }
 0x138   : > { %v224_v41 = vadd.f32 %v220_v38, %v180_v37 }
 0x139   : > { %v211_v44 = vpop.xlane.xlu1 %210 }
 0x13a   : > { %v228_v43 = vsub.f32 0.0, %v224_v41  ;;  %v219_v49 = vadd.f32 %v211_v44, %v1630_v10 }
 0x13c   : > { %v234_v45 = vmul.f32 1.442695, %v228_v43 }
 0x13d   : > { %v171_v47 = vpop.xlane.xlu0 %170  ;;  %v177_v48 = vpop.xlane.xlu2 %176 }
 0x13e   : > { %983 = vpow2.f32 %v234_v45  ;;  %v179_v50 = vadd.f32 %v171_v47, %v1630_v10  ;;  %v181_v51 = vadd.f32 %v177_v48, %v1628_v12 }
 0x140   : > { %v223_v52 = vadd.f32 %v219_v49, %v179_v50  ;;  %v225_v53 = vadd.f32 %v221_v46, %v181_v51 }
 0x142   : > { %v227_v54 = vsub.f32 0.0, %v223_v52  ;;  %v229_v55 = vsub.f32 0.0, %v225_v53 }
 0x144   : > { %v984_v56 = vpop.eup %983  ;;  %v232_v57 = vmul.f32 1.442695, %v227_v54  ;;  %v236_v58 = vmul.f32 1.442695, %v229_v55 }
 0x145   : > { %v240_v59 = vadd.f32 1.0, %v984_v56  ;;  %v168_v60 = vpop.xlane.xlu2 %167  ;;  %v208_v61 = vpop.xlane.xlu0 %207 }
 0x146   : > { %985 = vpow2.f32 %v232_v57  ;;  %v178_v62 = vadd.f32 %v168_v60, %v1631_v9  ;;  %v218_v63 = vadd.f32 %v208_v61, %v1631_v9 }
 0x147   : > { %987 = vrcp.f32 %v240_v59  ;;  %v283_v48 = vand.u32 2147483648, %v240_v59  ;;  %v281_v50 = vand.u32 2147483647, %v240_v59  ;;  %vm277_vm2 = vweird.f32 %v240_v59 }
 0x148   : > { %989 = vpow2.f32 %v236_v58  ;;  %v222_v33 = vadd.f32 %v218_v63, %v178_v62 }
 0x149   : > { %v284_v55 = vor.u32 1.1754944e-38, %v283_v48  ;;  %vm282_vm4 = vcmp.eq.f32.partialorder %v281_v50, 8.507059e+37 }
 0x14a   : > { %v226_v37 = vsub.f32 0.0, %v222_v33 }
 0x14c   : > { %v986_v38 = vpop.eup %985  ;;  %v230_v41 = vmul.f32 1.442695, %v226_v37 }
 0x14d   : > { %v988_v42 = vpop.eup %987  ;;  %v239_v43 = vadd.f32 1.0, %v986_v38 }
 0x14e   : > { %v990_v44 = vpop.eup %989  ;;  %991 = vpow2.f32 %v230_v41  ;;  %v273_v45 = vmul.f32 %v988_v42, %v240_v59  ;;  %vm278_vm1 = vweird.f32 %v988_v42 }
 0x14f   : > { %993 = vrcp.f32 %v239_v43  ;;  %v241_v46 = vadd.f32 1.0, %v990_v44  ;;  %vm279_vm3 = vmor %vm277_vm2, %vm278_vm1  ;;  %v268_v63 = vand.u32 2147483648, %v239_v43  ;;  %v266_v38 = vand.u32 2147483647, %v239_v43 }
 0x150   : > { %v274_v47 = vsub.f32 1.0, %v273_v45  ;;  %vm262_vm6 = vweird.f32 %v239_v43  ;;  %vm330_vm1 = vcmask 261120   ;;  %vm395_vm2 = vcmask 1040384  }
 0x151   : > { %995 = vrcp.f32 %v241_v46  ;;  %v298_v41 = vand.u32 2147483648, %v241_v46  ;;  %v296_v44 = vand.u32 2147483647, %v241_v46  ;;  %vm292_vm8 = vweird.f32 %v241_v46 }
 0x152   : > { %v275_v49 = vmul.f32 %v988_v42, %v274_v47  ;;  %v269_v47 = vor.u32 1.1754944e-38, %v268_v63  ;;  %vm267_vm10 = vcmp.eq.f32.partialorder %v266_v38, 8.507059e+37 }
 0x153   : > { %vm297_vm12 = vcmp.eq.f32.partialorder %v296_v44, 8.507059e+37 }
 0x154   : > { %v992_v51 = vpop.eup %991  ;;  %v276_v52 = vadd.f32 %v988_v42, %v275_v49 }
 0x155   : > { %v994_v53 = vpop.eup %993  ;;  %v238_v54 = vadd.f32 1.0, %v992_v51  ;;  %v299_v51 = vor.u32 1.1754944e-38, %v298_v41 }
 0x156   : > { %v280_v56 = vsel %vm279_vm3, %v988_v42, %v276_v52  ;;  %v258_v57 = vmul.f32 %v994_v53, %v239_v43  ;;  %vm263_vm5 = vweird.f32 %v994_v53 }
 0x157   : > { %v996_v58 = vpop.eup %995  ;;  %997 = vrcp.f32 %v238_v54  ;;  %v285_v60 = vsel %vm282_vm4, %v284_v55, %v280_v56  ;;  %vm264_vm9 = vmor %vm262_vm6, %vm263_vm5  ;;  %vm247_vm14 = vweird.f32 %v238_v54 }
 0x158   : > { %314 = vperm.xlu2 %969, %v285_v60   ;;  %v288_v61 = vmul.f32 %v996_v58, %v241_v46  ;;  %v259_v62 = vsub.f32 1.0, %v258_v57  ;;  %vm293_vm7 = vweird.f32 %v996_v58  ;;  %v253_v57 = vand.u32 2147483648, %v238_v54 }
 0x159   : > { %vm294_vm11 = vmor %vm292_vm8, %vm293_vm7 }
 0x15a   : > { %v289_v33 = vsub.f32 1.0, %v288_v61  ;;  %v260_v37 = vmul.f32 %v994_v53, %v259_v62  ;;  %v251_v61 = vand.u32 2147483647, %v238_v54  ;;  %v254_v62 = vor.u32 1.1754944e-38, %v253_v57 }
 0x15c   : > { %v290_v59 = vmul.f32 %v996_v58, %v289_v33  ;;  %v261_v45 = vadd.f32 %v994_v53, %v260_v37  ;;  %vm252_vm0 = vcmp.eq.f32.partialorder %v251_v61, 8.507059e+37 }
 0x15d   : > { %v998_v42 = vpop.eup %997 }
 0x15e   : > { %v291_v48 = vadd.f32 %v996_v58, %v290_v59  ;;  %v265_v49 = vsel %vm264_vm9, %v994_v53, %v261_v45  ;;  %v243_v50 = vmul.f32 %v998_v42, %v238_v54  ;;  %vm248_vm13 = vweird.f32 %v998_v42 }
 0x15f   : > { %v270_v52 = vsel %vm267_vm10, %v269_v47, %v265_v49  ;;  %vm249_vm15 = vmor %vm247_vm14, %vm248_vm13  ;;  %vm570_vm10 = vcmask 1045504  }
 0x160   : > { %v295_v55 = vsel %vm294_vm11, %v996_v58, %v291_v48  ;;  %309 = vperm.xlu0 %970, %v270_v52   ;;  %v244_v56 = vsub.f32 1.0, %v243_v50 }
 0x161   : > { %v300_v43 = vsel %vm297_vm12, %v299_v51, %v295_v55 }
 0x162   : > { %319 = vperm.xlu1 %968, %v300_v43   ;;  %v245_v60 = vmul.f32 %v998_v42, %v244_v56 }
 0x164   : > { %v246_v46 = vadd.f32 %v998_v42, %v245_v60  ;;  %v398_v60 = vlaneseq }
 0x166   : > { %v250_v53 = vsel %vm249_vm15, %v998_v42, %v246_v46  ;;  %vm1424_vm3 = vcmp.lt.s32.totalorder %v398_v60, 256 }
 0x167   : > { %v255_v63 = vsel %vm252_vm0, %v254_v62, %v250_v53 }
 0x168   : > { %558 = vperm.xlu0 %970, %v1626_v14   ;;  %304 = vperm.xlu2 %969, %v255_v63  }
 0x170   : > { %563 = vperm.xlu2 %969, %v1625_v15  }
 0x1b2   : > { %v315_v58 = vpop.permute.xlu2 %314 }
 0x1b3   : > { %v1394_v44 = vmul.f32 %v315_v58, %v1309_v32  ;;  %v1397_v42 = vmul.f32 %v315_v58, %v1313_v34  ;;  %v1067_v58 = vmov 1  }
 0x1b4   : > { %971 = vset.pattern.permute.xlu1 %v1067_v58  ;;  %972 = vset.pattern.permute.xlu2 %v1067_v58 }
 0x1b5   : > { %606 = vperm.xlu1 %971, %v1625_v15   ;;  %602 = vperm.xlu2 %972, %v1626_v14  }
 0x1c2   : > { %v305_v33 = vpop.permute.xlu2 %304 }
 0x1c3   : > { %v1382_v37 = vmul.f32 %v305_v33, %v1305_v30  ;;  %v1385_v41 = vmul.f32 %v305_v33, %v1307_v31 }
 0x1c5   : > { %v374_v31 = vmax.f32 %v1382_v37, %v1394_v44 }
 0x1d2   : > { %v310_v38 = vpop.permute.xlu0 %309 }
 0x1d3   : > { %v1388_v54 = vmul.f32 %v310_v38, %v1315_v35  ;;  %v1391_v59 = vmul.f32 %v310_v38, %v1317_v36  ;;  %v383_v35 = vmax.f32 %v1385_v41, %v1397_v42 }
 0x1d4   : > { %v320_v45 = vpop.permute.xlu1 %319 }
 0x1d5   : > { %v1400_v30 = vmul.f32 %v320_v45, %v1323_v39  ;;  %v1403_v47 = vmul.f32 %v320_v45, %v1325_v40  ;;  %v1068_v45 = vmov 2  }
 0x1d6   : > { %974 = vset.pattern.permute.xlu0 %v1068_v45  ;;  %973 = vset.pattern.permute.xlu1 %v1068_v45 }
 0x1d7   : > { %v375_v32 = vmax.f32 %v1388_v54, %v1400_v30  ;;  %v384_v36 = vmax.f32 %v1391_v59, %v1403_v47  ;;  %346 = vmatpush.msra.mxu0 %v1400_v30  ;;  %366 = vmatpush.msra.mxu1 %v1403_v47 }
 0x1d9   : > { %v376_v34 = vmax.f32 %v374_v31, %v375_v32  ;;  %v385_v39 = vmax.f32 %v383_v35, %v384_v36  ;;  %347 = vmatpush.msra.mxu0 %v1394_v44  ;;  %367 = vmatpush.msra.mxu1 %v1397_v42  ;;  %v485_v32 = vperm.slane %v1245_v19, 1  ;;  %v484_v36 = vperm.slane %v1245_v19, 0 }
 0x1db   : > { %v377_v40 = vrot.slane %v376_v34, 4  ;;  %v386_v48 = vrot.slane %v385_v39, 4  ;;  %348 = vmatpush.msra.mxu0 %v1388_v54  ;;  %368 = vmatpush.msra.mxu1 %v1391_v59 }
 0x1dd   : > { %v378_v49 = vmax.f32 %v376_v34, %v377_v40  ;;  %v387_v50 = vmax.f32 %v385_v39, %v386_v48  ;;  %349 = vmatpush.msra.mxu0 %v1382_v37  ;;  %369 = vmatpush.msra.mxu1 %v1385_v41 }
 0x1de   : > { %933 = vmatmul.msk.f32.vlgmr.msra.gmra.mxu1 %vm330_vm1, %v1627_v13  ;;  %932 = vmatmul.msk.f32.vlgmr.msra.gmra.mxu0 %vm330_vm1, %v1627_v13 }
 0x1df   : > { %v379_v51 = vrot.slane %v378_v49, 2  ;;  %v388_v52 = vrot.slane %v387_v50, 2 }
 0x1e1   : > { %v389_v55 = vmax.f32 %v387_v50, %v388_v52  ;;  %v380_v56 = vmax.f32 %v378_v49, %v379_v51  ;;  %v1071_v51 = vmov 4   ;;  %v1076_v52 = vmov 6  }
 0x1e2   : > { %975 = vset.pattern.permute.xlu2 %v1071_v51 }
 0x1e3   : > { %v381_v43 = vrot.slane %v380_v56, 1  ;;  %v390_v57 = vrot.slane %v389_v55, 1 }
 0x1e5   : > { %v391_v61 = vmax.f32 %v389_v55, %v390_v57  ;;  %v382_v46 = vmax.f32 %v380_v56, %v381_v43  ;;  %v1077_v55 = vmov 5   ;;  %v1078_v56 = vmov 3   ;;  %v1448_v43 = vpop.permute.xlu2 %563 }
 0x1e7   : > { %v407_v53 = vrot.slane %v391_v61, 7 }
 0x1e9   : > { %v408_v63 = vsel %vm395_vm2, %v382_v46, %v407_v53  ;;  %v1454_v53 = vpop.permute.xlu0 %558 }
 0x1ea   : > { %411 = vst.msk [vmem:[#allocation2 + $0x17] ss:$8 sm:$0x3] %vm1424_vm3, %v408_v63  ;;  %v1457_v63 = vand.u32 127, %v398_v60  ;;  %v500_v60 = vperm.slane %v1250_v20, 0 }
 0x1ec   : > { %vm512_vm4 = vcmp.lt.s32.totalorder %v1457_v63, 96  ;;  %vm496_vm5 = vcmp.lt.s32.totalorder %v1457_v63, 112  ;;  %vm534_vm6 = vcmp.lt.s32.totalorder %v1457_v63, 80  ;;  %vm443_vm7 = vcmp.lt.s32.totalorder %v1457_v63, 32 }
 0x1ed   : > { %vm465_vm8 = vcmp.lt.s32.totalorder %v1457_v63, 16  ;;  %vm427_vm9 = vcmp.lt.s32.totalorder %v1457_v63, 48  ;;  %vm591_vm11 = vcmp.lt.s32.totalorder %v1457_v63, 3  ;;  %vm633_vm12 = vcmp.lt.s32.totalorder %v1457_v63, 2 }
 0x1ee   : > { %vm675_vm13 = vcmp.lt.s32.totalorder %v1457_v63, 1  ;;  %vm752_vm14 = vcmp.lt.s32.totalorder %v1457_v63, 127  ;;  %vm794_vm15 = vcmp.lt.s32.totalorder %v1457_v63, 126  ;;  %vm836_vm0 = vcmp.lt.s32.totalorder %v1457_v63, 125 }
 0x1ef   : > { %v846_v63 = vstv %s1591_s9 }
 0x20f   : > { %v1450_v57 = vpop.permute.xlu2 %602 }
 0x227   : > { %v1452_v62 = vpop.permute.xlu1 %606 }
 0x25b   : > { %v371_v33 = vpop.f32.mrf.mxu1  ;;  %v351_v38 = vpop.f32.mrf.mxu0 }
 0x25c   : > { %v394_v31 = vrot.slane %v371_v33, 7  ;;  %v516_v33 = vperm.slane %v1255_v21, 0 }
 0x25e   : > { %v396_v35 = vsel %vm395_vm2, %v351_v38, %v394_v31  ;;  %v517_v38 = vperm.slane %v1255_v21, 1 }
 0x25f   : > { %403 = vst.msk [vmem:[#allocation2 + $0x16] ss:$8 sm:$0x3] %vm1424_vm3, %v396_v35 }
 0x266   : > { %v414_v34 = vld [vmem:[#allocation2 + $0x18] sm:$0xc0]  ;;  %v413_v39 = vld [vmem:[#allocation2 + $0x10] sm:$0xc0] }
 0x267   : > { %v418_v40 = vrot.slane %v414_v34, 6  ;;  %v489_v48 = vmul.f32 %v485_v32, %v414_v34  ;;  %v417_v49 = vrot.slane %v413_v39, 6  ;;  %v488_v50 = vmul.f32 %v484_v36, %v413_v39 }
 0x269   : > { %491 = vst [vmem:[#allocation2 + $0x8] sm:$0xc0] %v489_v48  ;;  %441 = vrot.lane.b32.xlu0 %v418_v40, %s1069_s7  ;;  %510 = vrot.lane.b32.xlu2 %v418_v40, %s1070_s12  ;;  %v501_v48 = vperm.slane %v1250_v20, 1 }
 0x26a   : > { %490 = vst [vmem:[#allocation2] sm:$0xc0] %v488_v50  ;;  %508 = vrot.lane.b32.xlu1 %v417_v49, %s1070_s12  ;;  %v539_v50 = vperm.slane %v1260_v22, 1 }
 0x271   : > { %532 = vrot.lane.b32.xlu2 %v418_v40, %s1072_s13  ;;  %492 = vrot.lane.b32.xlu0 %v417_v49, %s1073_s14 }
 0x272   : > { %530 = vrot.lane.b32.xlu1 %v417_v49, %s1072_s13 }
 0x279   : > { %423 = vrot.lane.b32.xlu0 %v418_v40, %s1074_s8  ;;  %461 = vrot.lane.b32.xlu2 %v417_v49, %s1075_s1 }
 0x27a   : > { %439 = vrot.lane.b32.xlu1 %v417_v49, %s1069_s7 }
 0x281   : > { %644 = vperm.xlu0 %974, %v1626_v14   ;;  %494 = vrot.lane.b32.xlu2 %v418_v40, %s1073_s14 }
 0x282   : > { %463 = vrot.lane.b32.xlu1 %v418_v40, %s1075_s1 }
 0x289   : > { %979 = vset.pattern.permute.xlu0 %v1076_v52  ;;  %725 = vperm.xlu2 %975, %v1625_v15  }
 0x28a   : > { %421 = vrot.lane.b32.xlu1 %v417_v49, %s1074_s8  ;;  %809 = vperm.xlu0 %979, %v1625_v15   ;;  %v538_v49 = vperm.slane %v1260_v22, 0 }
 0x291   : > { %977 = vset.pattern.permute.xlu2 %v1077_v55 }
 0x292   : > { %648 = vperm.xlu1 %973, %v1625_v15   ;;  %767 = vperm.xlu2 %977, %v1625_v15  }
 0x29a   : > { %976 = vset.pattern.permute.xlu1 %v1071_v51  ;;  %980 = vset.pattern.permute.xlu2 %v1076_v52 }
 0x29b   : > { %721 = vperm.xlu1 %976, %v1626_v14   ;;  %805 = vperm.xlu2 %980, %v1626_v14  }
 0x2a3   : > { %978 = vset.pattern.permute.xlu1 %v1077_v55  ;;  %982 = vset.pattern.permute.xlu2 %v1078_v56 }
 0x2a4   : > { %763 = vperm.xlu1 %978, %v1626_v14   ;;  %686 = vperm.xlu2 %982, %v1626_v14  }
 0x2ac   : > { %981 = vset.pattern.permute.xlu1 %v1078_v56 }
 0x2ad   : > { %690 = vperm.xlu1 %981, %v1625_v15  }
 0x2c3   : > { %v511_v61 = vpop.permute.xlu2 %510 }
 0x2cb   : > { %v533_v46 = vpop.permute.xlu2 %532 }
 0x2d3   : > { %v462_v58 = vpop.permute.xlu2 %461 }
 0x2db   : > { %v442_v45 = vpop.permute.xlu0 %441  ;;  %v495_v51 = vpop.permute.xlu2 %494 }
 0x2dc   : > { %v509_v31 = vpop.permute.xlu1 %508 }
 0x2dd   : > { %v513_v35 = vsel %vm512_vm4, %v509_v31, %v511_v61  ;;  %v514_v32 = vsel %vm512_vm4, %v511_v61, %v509_v31 }
 0x2de   : > { %v520_v36 = vmul.f32 %v516_v33, %v513_v35  ;;  %v521_v34 = vmul.f32 %v517_v38, %v514_v32 }
 0x2e0   : > { %v524_v39 = vrot.slane %v520_v36, 6  ;;  %v525_v40 = vrot.slane %v521_v34, 6 }
 0x2e2   : > { %528 = vst [vmem:[#allocation2 + $0x10] sm:$0xc] %v524_v39 }
 0x2e3   : > { %529 = vst [vmem:[#allocation2 + $0x18] sm:$0xc] %v525_v40  ;;  %v493_v52 = vpop.permute.xlu0 %492  ;;  %v448_v40 = vperm.slane %v1235_v17, 1 }
 0x2e4   : > { %v531_v55 = vpop.permute.xlu1 %530  ;;  %v497_v56 = vsel %vm496_vm5, %v493_v52, %v495_v51  ;;  %v498_v61 = vsel %vm496_vm5, %v495_v51, %v493_v52 }
 0x2e5   : > { %v535_v33 = vsel %vm534_vm6, %v531_v55, %v533_v46  ;;  %v536_v38 = vsel %vm534_vm6, %v533_v46, %v531_v55  ;;  %v504_v31 = vmul.f32 %v500_v60, %v497_v56  ;;  %v505_v35 = vmul.f32 %v501_v48, %v498_v61 }
 0x2e6   : > { %v542_v32 = vmul.f32 %v538_v49, %v535_v33  ;;  %v543_v36 = vmul.f32 %v539_v50, %v536_v38  ;;  %v469_v50 = vperm.slane %v1240_v18, 0  ;;  %v470_v55 = vperm.slane %v1240_v18, 1 }
 0x2e7   : > { %506 = vst [vmem:[#allocation2 + $0x10] sm:$0x3] %v504_v31 }
 0x2e8   : > { %v546_v34 = vrot.slane %v542_v32, 4  ;;  %v547_v39 = vrot.slane %v543_v36, 4  ;;  %507 = vst [vmem:[#allocation2 + $0x18] sm:$0x3] %v505_v35  ;;  %v432_v36 = vperm.slane %v1230_v16, 1 }
 0x2ea   : > { %550 = vst [vmem:[#allocation2 + $0x10] sm:$0x30] %v546_v34 }
 0x2eb   : > { %551 = vst [vmem:[#allocation2 + $0x18] sm:$0x30] %v547_v39  ;;  %v424_v35 = vpop.permute.xlu0 %423 }
 0x2ec   : > { %v440_v1 = vpop.permute.xlu1 %439 }
 0x2ed   : > { %v444_v51 = vsel %vm443_vm7, %v440_v1, %v442_v45  ;;  %v445_v52 = vsel %vm443_vm7, %v442_v45, %v440_v1  ;;  %v431_v45 = vperm.slane %v1230_v16, 0 }
 0x2ee   : > { %v451_v46 = vmul.f32 %v447_v0, %v445_v52  ;;  %v452_v60 = vmul.f32 %v448_v40, %v444_v51  ;;  %v726_v0 = vpop.permute.xlu2 %725 }
 0x2f0   : > { %v455_v48 = vrot.slane %v451_v46, 6  ;;  %v456_v49 = vrot.slane %v452_v60, 6 }
 0x2f2   : > { %459 = vst [vmem:[#allocation2] sm:$0xc] %v455_v48  ;;  %v1479_v60 = vld [vmem:[#allocation2 + $0x18] sm:$0x3f] }
 0x2f3   : > { %460 = vst [vmem:[#allocation2 + $0x8] sm:$0xc] %v456_v49  ;;  %v645_v46 = vpop.permute.xlu0 %644 }
 0x2f4   : > { %v464_v56 = vpop.permute.xlu1 %463 }
 0x2f5   : > { %v466_v61 = vsel %vm465_vm8, %v462_v58, %v464_v56  ;;  %v467_v33 = vsel %vm465_vm8, %v464_v56, %v462_v58  ;;  %v1477_v58 = vld [vmem:[#allocation2 + $0x10] sm:$0x3f] }
 0x2f6   : > { %v473_v38 = vmul.f32 %v469_v50, %v467_v33  ;;  %v474_v31 = vmul.f32 %v470_v55, %v466_v61  ;;  %v768_v48 = vpop.permute.xlu2 %767  ;;  %v611_v50 = vmul.f32 %v1452_v62, %v1477_v58  ;;  %v568_v56 = vmul.f32 %v1448_v43, %v1477_v58 }
 0x2f7   : > { %v730_v61 = vmul.f32 %v726_v0, %v1477_v58 }
 0x2f8   : > { %v477_v32 = vrot.slane %v473_v38, 4  ;;  %v478_v1 = vrot.slane %v474_v31, 4  ;;  %v731_v38 = vmul.f32 %v726_v0, %v1479_v60  ;;  %v772_v31 = vmul.f32 %v768_v48, %v1477_v58 }
 0x2f9   : > { %v612_v0 = vmul.f32 %v1452_v62, %v1479_v60 }
 0x2fa   : > { %481 = vst [vmem:[#allocation2] sm:$0x30] %v477_v32 }
 0x2fb   : > { %482 = vst [vmem:[#allocation2 + $0x8] sm:$0x30] %v478_v1  ;;  %v569_v1 = vmul.f32 %v1448_v43, %v1479_v60  ;;  %v571_v43 = vsel %vm570_vm10, %v568_v56, 0.0  ;;  %v621_v56 = vsel %vm570_vm10, %v612_v0, 0.0 }
 0x2fc   : > { %v422_v34 = vpop.permute.xlu1 %421  ;;  %v810_v5 = vpop.permute.xlu0 %809 }
 0x2fd   : > { %v428_v39 = vsel %vm427_vm9, %v422_v34, %v424_v35  ;;  %v429_v40 = vsel %vm427_vm9, %v424_v35, %v422_v34  ;;  %v1491_v35 = vmul.f32 %v768_v48, %v1479_v60  ;;  %v579_v62 = vsel %vm570_vm10, %v569_v1, 0.0 }
 0x2fe   : > { %v435_v51 = vmul.f32 %v431_v45, %v429_v40  ;;  %v436_v52 = vmul.f32 %v432_v36, %v428_v39  ;;  %v613_v39 = vsel %vm570_vm10, %v611_v50, 0.0  ;;  %v814_v0 = vmul.f32 %v810_v5, %v1477_v58 }
 0x300   : > { %437 = vst [vmem:[#allocation2] sm:$0x3] %v435_v51 }
 0x301   : > { %438 = vst [vmem:[#allocation2 + $0x8] sm:$0x3] %v436_v52 }
 0x304   : > { %v649_v49 = vpop.permute.xlu1 %648 }
 0x305   : > { %v653_v55 = vmul.f32 %v649_v49, %v1477_v58  ;;  %v654_v33 = vmul.f32 %v649_v49, %v1479_v60 }
 0x307   : > { %v1493_v32 = vld [vmem:[#allocation2] sm:$0xff]  ;;  %v655_v51 = vsel %vm570_vm10, %v653_v55, 0.0  ;;  %v663_v49 = vsel %vm570_vm10, %v654_v33, 0.0  ;;  %v732_v55 = vsel %vm570_vm10, %v730_v61, 0.0  ;;  %v815_v61 = vmul.f32 %v810_v5, %v1479_v60 }
 0x308   : > { %v1497_v45 = vld [vmem:[#allocation2 + $0x8] sm:$0xff]  ;;  %v651_v36 = vmul.f32 %v645_v46, %v1493_v32  ;;  %v609_v34 = vmul.f32 %v1450_v57, %v1493_v32  ;;  %v566_v52 = vmul.f32 %v1454_v53, %v1493_v32 }
 0x309   : > { %v652_v40 = vmul.f32 %v645_v46, %v1497_v45  ;;  %v567_v3 = vmul.f32 %v1454_v53, %v1497_v45  ;;  %v610_v46 = vmul.f32 %v1450_v57, %v1497_v45  ;;  %v740_v53 = vsel %vm570_vm10, %v731_v38, 0.0 }
 0x30a   : > { %v656_v48 = vadd.f32 %v655_v51, %v651_v36  ;;  %v614_v2 = vadd.f32 %v613_v39, %v609_v34  ;;  %v572_v4 = vadd.f32 %v571_v43, %v566_v52  ;;  %v806_v52 = vpop.permute.xlu2 %805  ;;  %v824_v13 = vsel %vm570_vm10, %v815_v61, 0.0 }
 0x30b   : > { %v664_v50 = vadd.f32 %v663_v49, %v652_v40  ;;  %v580_v7 = vadd.f32 %v579_v62, %v567_v3  ;;  %v622_v51 = vadd.f32 %v621_v56, %v610_v46  ;;  %v774_v40 = vsel %vm570_vm10, %v772_v31, 0.0 }
 0x30c   : > { %v615_v6 = vrot.slane %v614_v2, 4  ;;  %v657_v36 = vrot.slane %v656_v48, 4  ;;  %v573_v39 = vrot.slane %v572_v4, 4  ;;  %v813_v62 = vmul.f32 %v806_v52, %v1497_v45 }
 0x30d   : > { %v665_v33 = vrot.slane %v664_v50, 4  ;;  %v722_v34 = vpop.permute.xlu1 %721  ;;  %v581_v46 = vrot.slane %v580_v7, 4  ;;  %v623_v31 = vrot.slane %v622_v51, 4  ;;  %v812_v5 = vmul.f32 %v806_v52, %v1493_v32 }
 0x30e   : > { %v728_v1 = vmul.f32 %v722_v34, %v1493_v32  ;;  %v729_v57 = vmul.f32 %v722_v34, %v1497_v45  ;;  %v616_v3 = vadd.f32 %v615_v6, %v614_v2  ;;  %v574_v49 = vadd.f32 %v573_v39, %v572_v4 }
 0x30f   : > { %v666_v43 = vadd.f32 %v665_v33, %v664_v50  ;;  %v658_v56 = vadd.f32 %v657_v36, %v656_v48  ;;  %v582_v12 = vadd.f32 %v581_v46, %v580_v7  ;;  %v624_v2 = vadd.f32 %v623_v31, %v622_v51 }
 0x310   : > { %v733_v8 = vadd.f32 %v732_v55, %v728_v1  ;;  %v617_v38 = vrot.slane %v616_v3, 2  ;;  %v575_v9 = vrot.slane %v574_v49, 2  ;;  %v741_v11 = vadd.f32 %v740_v53, %v729_v57 }
 0x311   : > { %v667_v34 = vrot.slane %v666_v43, 2  ;;  %v816_v4 = vsel %vm570_vm10, %v814_v0, 0.0  ;;  %v825_v6 = vadd.f32 %v824_v13, %v813_v62  ;;  %v583_v55 = vrot.slane %v582_v12, 2 }
 0x312   : > { %v734_v10 = vrot.slane %v733_v8, 4  ;;  %v618_v14 = vadd.f32 %v617_v38, %v616_v3  ;;  %v576_v50 = vadd.f32 %v575_v9, %v574_v49  ;;  %v625_v36 = vrot.slane %v624_v2, 2 }
 0x313   : > { %v659_v39 = vrot.slane %v658_v56, 2  ;;  %v742_v15 = vrot.slane %v741_v11, 4  ;;  %v584_v7 = vadd.f32 %v583_v55, %v582_v12  ;;  %v668_v57 = vadd.f32 %v667_v34, %v666_v43 }
 0x314   : > { %v619_v33 = vrot.slane %v618_v14, 1  ;;  %v577_v48 = vrot.slane %v576_v50, 1  ;;  %v735_v1 = vadd.f32 %v734_v10, %v733_v8  ;;  %v782_v52 = vsel %vm570_vm10, %v1491_v35, 0.0 }
 0x315   : > { %v817_v13 = vadd.f32 %v816_v4, %v812_v5  ;;  %v585_v49 = vrot.slane %v584_v7, 1  ;;  %v626_v0 = vadd.f32 %v625_v36, %v624_v2  ;;  %v826_v62 = vrot.slane %v825_v6, 4  ;;  %v687_v2 = vpop.permute.xlu2 %686 }
 0x316   : > { %v764_v53 = vpop.permute.xlu1 %763  ;;  %v620_v51 = vadd.f32 %v619_v33, %v618_v14  ;;  %v578_v3 = vadd.f32 %v577_v48, %v576_v50  ;;  %v660_v8 = vadd.f32 %v659_v39, %v658_v56  ;;  %v736_v10 = vrot.slane %v735_v1, 2 }
 0x317   : > { %v770_v61 = vmul.f32 %v764_v53, %v1493_v32  ;;  %v771_v9 = vmul.f32 %v764_v53, %v1497_v45  ;;  %v743_v12 = vadd.f32 %v742_v15, %v741_v11  ;;  %v586_v43 = vadd.f32 %v585_v49, %v584_v7 }
 0x318   : > { %629 = vrot.lane.b32.xlu2 %v620_v51, %s1079_s15  ;;  %587 = vrot.lane.b32.xlu1 %v578_v3, %s1080_s2  ;;  %v627_v34 = vrot.slane %v626_v0, 1  ;;  %v669_v50 = vrot.slane %v668_v57, 1  ;;  %v818_v35 = vrot.slane %v817_v13, 4  ;;  %v827_v4 = vadd.f32 %v826_v62, %v825_v6 }
 0x319   : > { %v775_v46 = vadd.f32 %v774_v40, %v770_v61  ;;  %v783_v38 = vadd.f32 %v782_v52, %v771_v9  ;;  %589 = vrot.lane.b32.xlu0 %v586_v43, %s1080_s2  ;;  %v661_v40 = vrot.slane %v660_v8, 1  ;;  %v744_v55 = vrot.slane %v743_v12, 2 }
 0x31a   : > { %v737_v33 = vadd.f32 %v736_v10, %v735_v1  ;;  %v628_v61 = vadd.f32 %v627_v34, %v626_v0  ;;  %v670_v56 = vadd.f32 %v669_v50, %v668_v57  ;;  %v693_v11 = vmul.f32 %v687_v2, %v1493_v32 }
 0x31b   : > { %v776_v14 = vrot.slane %v775_v46, 4  ;;  %v784_v31 = vrot.slane %v783_v38, 4  ;;  %v694_v15 = vmul.f32 %v687_v2, %v1497_v45  ;;  %v819_v9 = vadd.f32 %v818_v35, %v817_v13 }
 0x31c   : > { %v828_v6 = vrot.slane %v827_v4, 2  ;;  %v662_v1 = vadd.f32 %v661_v40, %v660_v8  ;;  %v738_v52 = vrot.slane %v737_v33, 1  ;;  %v745_v32 = vadd.f32 %v744_v55, %v743_v12 }
 0x31d   : > { %v777_v5 = vadd.f32 %v776_v14, %v775_v46  ;;  %v785_v36 = vadd.f32 %v784_v31, %v783_v38  ;;  %v820_v46 = vrot.slane %v819_v9, 2 }
 0x31e   : > { %v746_v38 = vrot.slane %v745_v32, 1  ;;  %v829_v10 = vadd.f32 %v828_v6, %v827_v4  ;;  %v739_v14 = vadd.f32 %v738_v52, %v737_v33 }
 0x31f   : > { %v778_v48 = vrot.slane %v777_v5, 2  ;;  %v691_v53 = vpop.permute.xlu1 %690  ;;  %v786_v49 = vrot.slane %v785_v36, 2  ;;  %v821_v35 = vadd.f32 %v820_v46, %v819_v9 }
 0x320   : > { %v695_v39 = vmul.f32 %v691_v53, %v1477_v58  ;;  %v696_v7 = vmul.f32 %v691_v53, %v1479_v60  ;;  %631 = vrot.lane.b32.xlu1 %v628_v61, %s1079_s15  ;;  %673 = vrot.lane.b32.xlu2 %v670_v56, %s1081_s16  ;;  %v747_v12 = vadd.f32 %v746_v38, %v745_v32  ;;  %v830_v55 = vrot.slane %v829_v10, 1 }
 0x321   : > { %v779_v51 = vadd.f32 %v778_v48, %v777_v5  ;;  %671 = vrot.lane.b32.xlu0 %v662_v1, %s1081_s16  ;;  %v787_v31 = vadd.f32 %v786_v49, %v785_v36  ;;  %v822_v4 = vrot.slane %v821_v35, 1 }
 0x322   : > { %v697_v3 = vsel %vm570_vm10, %v695_v39, 0.0  ;;  %v705_v57 = vsel %vm570_vm10, %v696_v7, 0.0  ;;  %v831_v33 = vadd.f32 %v830_v55, %v829_v10 }
 0x323   : > { %v698_v45 = vadd.f32 %v697_v3, %v693_v11  ;;  %v706_v0 = vadd.f32 %v705_v57, %v694_v15  ;;  %v780_v58 = vrot.slane %v779_v51, 1  ;;  %v788_v40 = vrot.slane %v787_v31, 1 }
 0x324   : > { %v823_v15 = vadd.f32 %v822_v4, %v821_v35 }
 0x325   : > { %v699_v60 = vrot.slane %v698_v45, 4  ;;  %v707_v13 = vrot.slane %v706_v0, 4  ;;  %v781_v62 = vadd.f32 %v780_v58, %v779_v51  ;;  %v789_v56 = vadd.f32 %v788_v40, %v787_v31 }
 0x327   : > { %v700_v43 = vadd.f32 %v699_v60, %v698_v45  ;;  %v708_v8 = vadd.f32 %v707_v13, %v706_v0 }
 0x328   : > { %748 = vrot.lane.b32.xlu1 %v739_v14, %s1082_s17  ;;  %790 = vrot.lane.b32.xlu2 %v781_v62, %s1083_s20 }
 0x329   : > { %v701_v34 = vrot.slane %v700_v43, 2  ;;  %v709_v50 = vrot.slane %v708_v8, 2  ;;  %750 = vrot.lane.b32.xlu0 %v747_v12, %s1082_s17 }
 0x32b   : > { %v702_v2 = vadd.f32 %v701_v34, %v700_v43  ;;  %v710_v5 = vadd.f32 %v709_v50, %v708_v8 }
 0x32d   : > { %v703_v48 = vrot.slane %v702_v2, 1  ;;  %v711_v53 = vrot.slane %v710_v5, 1 }
 0x32f   : > { %v712_v61 = vadd.f32 %v711_v53, %v710_v5  ;;  %v704_v36 = vadd.f32 %v703_v48, %v702_v2 }
 0x330   : > { %792 = vrot.lane.b32.xlu1 %v789_v56, %s1083_s20  ;;  %834 = vrot.lane.b32.xlu2 %v831_v33, %s1084_s21 }
 0x331   : > { %v715_v11 = vrot.slane %v712_v61, 7  ;;  %832 = vrot.lane.b32.xlu0 %v823_v15, %s1084_s21 }
 0x333   : > { %v716_v39 = vsel %vm395_vm2, %v704_v36, %v715_v11 }
 0x334   : > { %v718_v48 = vmul.f32 %v1280_v26, %v716_v39 }
 0x372   : > { %v630_v7 = vpop.permute.xlu2 %629 }
 0x37a   : > { %v674_v1 = vpop.permute.xlu2 %673 }
 0x382   : > { %v791_v10 = vpop.permute.xlu2 %790 }
 0x38a   : > { %v588_v9 = vpop.permute.xlu1 %587  ;;  %v835_v56 = vpop.permute.xlu2 %834 }
 0x38b   : > { %v590_v6 = vpop.permute.xlu0 %589 }
 0x38c   : > { %v592_v51 = vsel %vm591_vm11, %v588_v9, %v590_v6  ;;  %v593_v60 = vsel %vm591_vm11, %v590_v6, %v588_v9 }
 0x38d   : > { %v596_v52 = vrot.slane %v592_v51, 7 }
 0x38f   : > { %v597_v13 = vsel %vm395_vm2, %v593_v60, %v596_v52 }
 0x390   : > { %v599_v43 = vmul.f32 %v597_v13, %v1265_v23 }
 0x392   : > { %v632_v3 = vpop.permute.xlu1 %631 }
 0x393   : > { %v634_v57 = vsel %vm633_vm12, %v630_v7, %v632_v3  ;;  %v635_v49 = vsel %vm633_vm12, %v632_v3, %v630_v7  ;;  %v672_v45 = vpop.permute.xlu0 %671 }
 0x394   : > { %v638_v32 = vrot.slane %v634_v57, 7  ;;  %v676_v58 = vsel %vm675_vm13, %v672_v45, %v674_v1  ;;  %v677_v8 = vsel %vm675_vm13, %v674_v1, %v672_v45 }
 0x395   : > { %v680_v62 = vrot.slane %v676_v58, 7 }
 0x396   : > { %v639_v0 = vsel %vm395_vm2, %v635_v49, %v638_v32 }
 0x397   : > { %v641_v46 = vmul.f32 %v1270_v24, %v639_v0  ;;  %v681_v14 = vsel %vm395_vm2, %v677_v8, %v680_v62 }
 0x398   : > { %v683_v12 = vmul.f32 %v1275_v25, %v681_v14 }
 0x399   : > { %v642_v31 = vadd.f32 %v641_v46, %v599_v43 }
 0x39a   : > { %v749_v38 = vpop.permute.xlu1 %748 }
 0x39b   : > { %v751_v34 = vpop.permute.xlu0 %750  ;;  %v684_v5 = vadd.f32 %v683_v12, %v642_v31 }
 0x39c   : > { %v754_v50 = vsel %vm752_vm14, %v751_v34, %v749_v38  ;;  %v753_v2 = vsel %vm752_vm14, %v749_v38, %v751_v34 }
 0x39d   : > { %v757_v35 = vrot.slane %v754_v50, 7  ;;  %v719_v33 = vadd.f32 %v718_v48, %v684_v5 }
 0x39f   : > { %v758_v40 = vsel %vm395_vm2, %v753_v2, %v757_v35 }
 0x3a0   : > { %v760_v53 = vmul.f32 %v1285_v27, %v758_v40 }
 0x3a2   : > { %v793_v55 = vpop.permute.xlu1 %792  ;;  %v761_v9 = vadd.f32 %v760_v53, %v719_v33 }
 0x3a3   : > { %v796_v4 = vsel %vm794_vm15, %v793_v55, %v791_v10  ;;  %v795_v36 = vsel %vm794_vm15, %v791_v10, %v793_v55  ;;  %v833_v11 = vpop.permute.xlu0 %832 }
 0x3a4   : > { %v799_v61 = vrot.slane %v796_v4, 7  ;;  %v838_v7 = vsel %vm836_vm0, %v835_v56, %v833_v11  ;;  %v837_v51 = vsel %vm836_vm0, %v833_v11, %v835_v56 }
 0x3a5   : > { %v841_v1 = vrot.slane %v838_v7, 7 }
 0x3a6   : > { %v800_v15 = vsel %vm395_vm2, %v795_v36, %v799_v61 }
 0x3a7   : > { %v802_v6 = vmul.f32 %v1290_v28, %v800_v15  ;;  %v842_v39 = vsel %vm395_vm2, %v837_v51, %v841_v1 }
 0x3a8   : > { %v844_v57 = vmul.f32 %v1295_v29, %v842_v39 }
 0x3a9   : > { %v803_v3 = vadd.f32 %v802_v6, %v761_v9 }
 0x3ab   : > { %v845_v52 = vadd.f32 %v844_v57, %v803_v3 }
 0x3ad   : > { %v847_v32 = vadd.f32 %v846_v63, %v845_v52 }
 0x3af   : > { %v848_v49 = vsub.f32 0.0, %v847_v32 }
 0x3b1   : > { %v849_v45 = vmul.f32 1.442695, %v848_v49 }
 0x3b3   : > { %999 = vpow2.f32 %v849_v45 }
 0x3b9   : > { %v1000_v0 = vpop.eup %999 }
 0x3ba   : > { %v851_v58 = vadd.f32 1.0, %v1000_v0 }
 0x3bc   : > { %1001 = vrcp.f32 %v851_v58  ;;  %v863_v46 = vand.u32 2147483648, %v851_v58  ;;  %v861_v10 = vand.u32 2147483647, %v851_v58  ;;  %vm857_vm2 = vweird.f32 %v851_v58 }
 0x3be   : > { %v864_v8 = vor.u32 1.1754944e-38, %v863_v46  ;;  %vm862_vm4 = vcmp.eq.f32.partialorder %v861_v10, 8.507059e+37 }
 0x3c2   : > { %v1002_v60 = vpop.eup %1001 }
 0x3c3   : > { %v853_v13 = vmul.f32 %v1002_v60, %v851_v58  ;;  %vm858_vm1 = vweird.f32 %v1002_v60 }
 0x3c4   : > { %vm859_vm3 = vmor %vm857_vm2, %vm858_vm1 }
 0x3c5   : > { %v854_v62 = vsub.f32 1.0, %v853_v13 }
 0x3c7   : > { %v855_v38 = vmul.f32 %v1002_v60, %v854_v62 }
 0x3c9   : > { %v856_v43 = vadd.f32 %v1002_v60, %v855_v38 }
 0x3cb   : > { %v860_v14 = vsel %vm859_vm3, %v1002_v60, %v856_v43 }
 0x3cc   : > { %v865_v31 = vsel %vm862_vm4, %v864_v8, %v860_v14 }
 0x3cd   : > { %v868_v34 = vperm.slane %v865_v31, 0  ;;  %v869_v50 = vperm.slane %v865_v31, 1 }
 0x3cf   : > { %v872_v12 = vmul.f32 %v868_v34, %v1382_v37  ;;  %v873_v35 = vmul.f32 %v869_v50, %v1385_v41  ;;  %v874_v2 = vmul.f32 %v868_v34, %v1388_v54  ;;  %v875_v5 = vmul.f32 %v869_v50, %v1391_v59 }
 0x3d0   : > { %v876_v40 = vmul.f32 %v868_v34, %v1394_v44  ;;  %v877_v55 = vmul.f32 %v869_v50, %v1397_v42  ;;  %v878_v48 = vmul.f32 %v868_v34, %v1400_v30  ;;  %v879_v53 = vmul.f32 %v869_v50, %v1403_v47 }
 0x3d1   : > { %882 = vst [vmem:[%s881_s0] sm:$0xff] %v872_v12 }
 0x3d2   : > { %883 = vst [vmem:[%s881_s0 + $0x8] sm:$0xff] %v873_v35 }
 0x3d3   : > { %884 = vst [vmem:[%s881_s0 + $0x10] sm:$0xff] %v874_v2 }
 0x3d4   : > { %885 = vst [vmem:[%s881_s0 + $0x18] sm:$0xff] %v875_v5  ;;  %100 = sbr.rel (!%p98_p0) target bundleno = 25 (0x19), region = 87 }
 0x3d5   : > { %886 = vst [vmem:[%s881_s0 + $0x20] sm:$0xff] %v876_v40 }
 0x3d6   : > { %887 = vst [vmem:[%s881_s0 + $0x28] sm:$0xff] %v877_v55 }
 0x3d7   : > { %888 = vst [vmem:[%s881_s0 + $0x30] sm:$0xff] %v878_v48 }
 0x3d8   : > { %889 = vst [vmem:[%s881_s0 + $0x38] sm:$0xff] %v879_v53 }
 0x3d9   :  { %902 = dma.vmem_to_hbm [thread:$0]  %s895_s26, 2048, %s897_s25, [#allocation6], %s1064_s18, %s1064_s18, %s1065_s19  }
 0x3da   :  { %1057 = dma.done.wait [#allocation6], 2048  }
 0x3db   :  { %1058 = vsyncadd [#allocation6], 4294965248 }
 0x3dc   :  { %907 = vsyncpa [#allocation5], 1 }
 0x3dd   :  { %908 = vsyncpa [#allocation6], 1 }

</bundles_post_ra>
